<compile_context>
chip_gen: v7x
topology: tpu7x:2x2x1
jax: 0.10.0
libtpu: 0.0.40
codegen_flags: <defaults>
</compile_context>

<pallas_src>
import jax
import jax.numpy as jnp
from jax import lax
from jax.experimental import pallas as pl
from jax.experimental.pallas import tpu as pltpu

EPS = 1e-5
NEG_SLOPE = 0.1
LANES = 128


def _round_up(x, m):
    return (x + m - 1) // m * m


def _pick_row_tile(H, W, max_rows):
    """Largest divisor TH of H such that TH * W <= max_rows (falls back to 1)."""
    th = 1
    for cand in range(1, H + 1):
        if H % cand == 0 and cand * W <= max_rows:
            th = cand
    return th


def _pick_m_tile(M, cap=1024):
    """Largest multiple-of-8 divisor of M that is <= cap; falls back to M."""
    best = None
    for cand in range(8, min(M, cap) + 1, 8):
        if M % cand == 0:
            best = cand
    return best if best is not None else M


def cnn_block_forward(x, conv_w, bn_gamma, bn_beta, *, max_tile_rows=1024):
    """x: (N, Cin, H, W); conv_w: (Cout, Cin, 3, 3); bn_*: (Cout,). Returns (N, Cout, H, W)."""
    N, Cin, H, W = x.shape
    Cout = conv_w.shape[0]
    assert conv_w.shape == (Cout, Cin, 3, 3)
    Cpad = _round_up(Cout, LANES)          # lane-dense output channels
    M = N * H * W
    K = 9 * Cin

    TH = _pick_row_tile(H, W, max_tile_rows)   # rows of output per phase-1 tile
    n_h = H // TH

    # ---------------- wrapper-side prep (NO 9x im2col in HBM) ----------------
    # NHWC + spatial pad, then halo'd row tiles: xe[g] = xp[n, t*TH : t*TH+TH+2] with
    # g = n*n_h + t.  Overhead vs raw input is only the pad + 2-row halo (~1.1x).
    x_nhwc = jnp.transpose(x, (0, 2, 3, 1))                          # (N, H, W, Cin)
    xp = jnp.pad(x_nhwc, ((0, 0), (1, 1), (1, 1), (0, 0)))           # (N, H+2, W+2, Cin)
    xe = jnp.stack([xp[:, t * TH: t * TH + TH + 2] for t in range(n_h)], axis=1)
    xe = xe.reshape(N * n_h, TH + 2, W + 2, Cin).astype(jnp.bfloat16)

    # Conv weight as 9 (Cin, Cpad) taps (dy-major), bf16, Cout zero-padded to 128 lanes.
    w_t = jnp.transpose(conv_w, (2, 3, 1, 0)).reshape(9, Cin, Cout)
    w_t = jnp.pad(w_t, ((0, 0), (0, 0), (0, Cpad - Cout))).astype(jnp.bfloat16)

    # -------- phase 1: conv (9 shifted MXU matmuls, f32 acc) + partial BN stats --------
    def conv_stats_kernel(x_ref, w_ref, y_ref, st_ref):
        # x_ref: (TH+2, W+2, Cin) bf16   w_ref: (9, Cin, Cpad) bf16
        # y_ref: (TH, W, Cpad) f32       st_ref: (2, Cpad) f32  [sum; sum of squares]
        acc = jnp.zeros((TH * W, Cpad), jnp.float32)
        for dy in range(3):
            for dx in range(3):
                tap = x_ref[dy:dy + TH, dx:dx + W, :].reshape(TH * W, Cin)
                acc = acc + jnp.dot(tap, w_ref[dy * 3 + dx],
                                    preferred_element_type=jnp.float32)
        y_ref[...] = acc.reshape(TH, W, Cpad)
        st_ref[0:1, :] = jnp.sum(acc, axis=0, keepdims=True)
        st_ref[1:2, :] = jnp.sum(acc * acc, axis=0, keepdims=True)

    cost1 = pl.CostEstimate(
        flops=2 * M * K * Cpad,
        transcendentals=0,
        bytes_accessed=xe.size * 2 + w_t.size * 2 + M * Cpad * 4 + N * n_h * 2 * Cpad * 4)

    y, stats = pl.pallas_call(
        conv_stats_kernel,
        out_shape=(jax.ShapeDtypeStruct((N, H, W, Cpad), jnp.float32),
                   jax.ShapeDtypeStruct((N * n_h, 2, Cpad), jnp.float32)),
        grid=(N, n_h),
        in_specs=[
            pl.BlockSpec((None, TH + 2, W + 2, Cin), lambda n, t: (n * n_h + t, 0, 0, 0)),
            pl.BlockSpec((9, Cin, Cpad), lambda n, t: (0, 0, 0)),
        ],
        out_specs=(
            pl.BlockSpec((None, TH, W, Cpad), lambda n, t: (n, t, 0, 0)),
            pl.BlockSpec((None, 2, Cpad), lambda n, t: (n * n_h + t, 0, 0)),
        ),
        compiler_params=pltpu.CompilerParams(
            dimension_semantics=("parallel", "parallel")),
        cost_estimate=cost1,
    )(xe, w_t)

    # ------ tiny wrapper-side combine: batch stats -> per-channel scale / bias ------
    tot = jnp.sum(stats, axis=0)                        # (2, Cpad), f32 accumulators
    mean = tot[0] / M
    var = jnp.maximum(tot[1] / M - mean * mean, 0.0)    # biased var (PyTorch BN training norm)
    gamma_p = jnp.pad(bn_gamma.astype(jnp.float32), (0, Cpad - Cout))
    beta_p = jnp.pad(bn_beta.astype(jnp.float32), (0, Cpad - Cout))
    inv_std = lax.rsqrt(var + EPS)
    scale = (gamma_p * inv_std).reshape(1, Cpad)
    bias = (beta_p - mean * gamma_p * inv_std).reshape(1, Cpad)

    # -------- phase 2: z = y*scale + bias, LeakyReLU — lane-dense, M-tiled, parallel --------
    TM = _pick_m_tile(M)
    y2 = y.reshape(M, Cpad)    # contiguous, free reshape

    def apply_kernel(y_ref, s_ref, b_ref, o_ref):
        z = y_ref[...] * s_ref[...] + b_ref[...]
        o_ref[...] = jnp.where(z > 0, z, NEG_SLOPE * z)

    cost2 = pl.CostEstimate(flops=3 * M * Cpad, transcendentals=0,
                            bytes_accessed=2 * M * Cpad * 4 + 2 * Cpad * 4)

    out = pl.pallas_call(
        apply_kernel,
        out_shape=jax.ShapeDtypeStruct((M, Cpad), jnp.float32),
        grid=(M // TM,),
        in_specs=[
            pl.BlockSpec((TM, Cpad), lambda i: (i, 0)),
            pl.BlockSpec((1, Cpad), lambda i: (0, 0)),
            pl.BlockSpec((1, Cpad), lambda i: (0, 0)),
        ],
        out_specs=pl.BlockSpec((TM, Cpad), lambda i: (i, 0)),
        compiler_params=pltpu.CompilerParams(dimension_semantics=("parallel",)),
        cost_estimate=cost2,
    )(y2, scale, bias)

    out = out[:, :Cout].reshape(N, H, W, Cout)
    return jnp.transpose(out, (0, 3, 1, 2))             # back to NCHW


def cnn_block_reference(x, conv_w, bn_gamma, bn_beta):
    """Pure-JAX f32 reference matching PyTorch CNNBlock.forward (bn_act=True, training-mode BN)."""
    y = lax.conv_general_dilated(
        x, conv_w, window_strides=(1, 1), padding=((1, 1), (1, 1)),
        dimension_numbers=("NCHW", "OIHW", "NCHW"))
    mean = jnp.mean(y, axis=(0, 2, 3), keepdims=True)
    var = jnp.mean((y - mean) ** 2, axis=(0, 2, 3), keepdims=True)
    y_hat = (y - mean) / jnp.sqrt(var + EPS)
    z = bn_gamma.reshape(1, -1, 1, 1) * y_hat + bn_beta.reshape(1, -1, 1, 1)
    return jnp.where(z > 0, z, NEG_SLOPE * z)


if __name__ == "__main__":
    key = jax.random.PRNGKey(0)
    k_x, k_w, k_g, k_b = jax.random.split(key, 4)

    N, Cin, H, W = 2, 4, 16, 16
    Cout = 8

    x = jax.random.normal(k_x, (N, Cin, H, W), dtype=jnp.float32)
    conv_w = jax.random.normal(k_w, (Cout, Cin, 3, 3), dtype=jnp.float32) * 0.1
    bn_gamma = 1.0 + 0.1 * jax.random.normal(k_g, (Cout,), dtype=jnp.float32)
    bn_beta = 0.1 * jax.random.normal(k_b, (Cout,), dtype=jnp.float32)

    # max_tile_rows=128 -> TH=8, n_h=2: exercises the halo'd multi-row-tile path at toy size.
    out = cnn_block_forward(x, conv_w, bn_gamma, bn_beta, max_tile_rows=128)
    out = jax.block_until_ready(out)

    ref = cnn_block_reference(x, conv_w, bn_gamma, bn_beta)
    assert out.shape == (N, Cout, H, W)
    # bf16 matmul inputs (with f32 accumulation) vs f32 reference -> loosened tolerance.
    assert jnp.allclose(out, ref, rtol=2e-2, atol=2e-2), "mismatch vs reference"

    print("KERNEL_OK")
</pallas_src>

<mosaic_0001>
module attributes {stable_mosaic.version = 11 : i64} {
  func.func @conv_stats_kernel(%arg0: i32, %arg1: i32, %arg2: memref<1x10x18x4xbf16, #tpu.memory_space<vmem>>, %arg3: memref<9x4x128xbf16, #tpu.memory_space<vmem>>, %arg4: memref<1x8x16x128xf32, #tpu.memory_space<vmem>>, %arg5: memref<1x2x128xf32, #tpu.memory_space<vmem>>) attributes {dimension_semantics = [#tpu.dimension_semantics<parallel>, #tpu.dimension_semantics<parallel>], iteration_bounds = array<i64: 2, 2>, scalar_prefetch = 0 : i64, scratch_operands = 0 : i64, tpu.core_type = #tpu.core_type<tc>, window_params = [{transform_indices = @transform_0, window_bounds = array<i64: 1, 10, 18, 4>}, {pipeline_mode = #tpu.pipeline_mode<synchronous>, transform_indices = @transform_1, window_bounds = array<i64: 9, 4, 128>}, {transform_indices = @transform_2, window_bounds = array<i64: 1, 8, 16, 128>}, {transform_indices = @transform_3, window_bounds = array<i64: 1, 2, 128>}]} {
    %cst = arith.constant 0.000000e+00 : f32
    %0 = vector.broadcast %cst : f32 to vector<128x128xf32>
    %c0 = arith.constant 0 : index
    %c0_0 = arith.constant 0 : index
    %c0_1 = arith.constant 0 : index
    %c0_2 = arith.constant 0 : index
    %1 = vector.load %arg2[%c0, %c0_0, %c0_1, %c0_2] : memref<1x10x18x4xbf16, #tpu.memory_space<vmem>>, vector<1x8x16x4xbf16>
    %2 = vector.shape_cast %1 : vector<1x8x16x4xbf16> to vector<8x16x4xbf16>
    %3 = vector.shape_cast %2 : vector<8x16x4xbf16> to vector<128x4xbf16>
    %c0_3 = arith.constant 0 : index
    %c0_4 = arith.constant 0 : index
    %c0_5 = arith.constant 0 : index
    %4 = vector.load %arg3[%c0_3, %c0_4, %c0_5] : memref<9x4x128xbf16, #tpu.memory_space<vmem>>, vector<1x4x128xbf16>
    %5 = vector.shape_cast %4 : vector<1x4x128xbf16> to vector<4x128xbf16>
    %cst_6 = arith.constant dense<0.000000e+00> : vector<128x128xf32>
    %6 = tpu.matmul %3, %5, %cst_6 {dimension_numbers = #tpu.dot_dimension_numbers<[1], [0], [0], [1], [0, 0, 1, 1], [], []>} : vector<128x4xbf16>, vector<4x128xbf16>, vector<128x128xf32> -> vector<128x128xf32>
    %7 = arith.addf %0, %6 : vector<128x128xf32>
    %c0_7 = arith.constant 0 : index
    %c0_8 = arith.constant 0 : index
    %c1 = arith.constant 1 : index
    %c0_9 = arith.constant 0 : index
    %8 = vector.load %arg2[%c0_7, %c0_8, %c1, %c0_9] : memref<1x10x18x4xbf16, #tpu.memory_space<vmem>>, vector<1x8x16x4xbf16>
    %9 = vector.shape_cast %8 : vector<1x8x16x4xbf16> to vector<8x16x4xbf16>
    %10 = vector.shape_cast %9 : vector<8x16x4xbf16> to vector<128x4xbf16>
    %c1_10 = arith.constant 1 : index
    %c0_11 = arith.constant 0 : index
    %c0_12 = arith.constant 0 : index
    %11 = vector.load %arg3[%c1_10, %c0_11, %c0_12] : memref<9x4x128xbf16, #tpu.memory_space<vmem>>, vector<1x4x128xbf16>
    %12 = vector.shape_cast %11 : vector<1x4x128xbf16> to vector<4x128xbf16>
    %cst_13 = arith.constant dense<0.000000e+00> : vector<128x128xf32>
    %13 = tpu.matmul %10, %12, %cst_13 {dimension_numbers = #tpu.dot_dimension_numbers<[1], [0], [0], [1], [0, 0, 1, 1], [], []>} : vector<128x4xbf16>, vector<4x128xbf16>, vector<128x128xf32> -> vector<128x128xf32>
    %14 = arith.addf %7, %13 : vector<128x128xf32>
    %c0_14 = arith.constant 0 : index
    %c0_15 = arith.constant 0 : index
    %c2 = arith.constant 2 : index
    %c0_16 = arith.constant 0 : index
    %15 = vector.load %arg2[%c0_14, %c0_15, %c2, %c0_16] : memref<1x10x18x4xbf16, #tpu.memory_space<vmem>>, vector<1x8x16x4xbf16>
    %16 = vector.shape_cast %15 : vector<1x8x16x4xbf16> to vector<8x16x4xbf16>
    %17 = vector.shape_cast %16 : vector<8x16x4xbf16> to vector<128x4xbf16>
    %c2_17 = arith.constant 2 : index
    %c0_18 = arith.constant 0 : index
    %c0_19 = arith.constant 0 : index
    %18 = vector.load %arg3[%c2_17, %c0_18, %c0_19] : memref<9x4x128xbf16, #tpu.memory_space<vmem>>, vector<1x4x128xbf16>
    %19 = vector.shape_cast %18 : vector<1x4x128xbf16> to vector<4x128xbf16>
    %cst_20 = arith.constant dense<0.000000e+00> : vector<128x128xf32>
    %20 = tpu.matmul %17, %19, %cst_20 {dimension_numbers = #tpu.dot_dimension_numbers<[1], [0], [0], [1], [0, 0, 1, 1], [], []>} : vector<128x4xbf16>, vector<4x128xbf16>, vector<128x128xf32> -> vector<128x128xf32>
    %21 = arith.addf %14, %20 : vector<128x128xf32>
    %c0_21 = arith.constant 0 : index
    %c1_22 = arith.constant 1 : index
    %c0_23 = arith.constant 0 : index
    %c0_24 = arith.constant 0 : index
    %22 = vector.load %arg2[%c0_21, %c1_22, %c0_23, %c0_24] : memref<1x10x18x4xbf16, #tpu.memory_space<vmem>>, vector<1x8x16x4xbf16>
    %23 = vector.shape_cast %22 : vector<1x8x16x4xbf16> to vector<8x16x4xbf16>
    %24 = vector.shape_cast %23 : vector<8x16x4xbf16> to vector<128x4xbf16>
    %c3 = arith.constant 3 : index
    %c0_25 = arith.constant 0 : index
    %c0_26 = arith.constant 0 : index
    %25 = vector.load %arg3[%c3, %c0_25, %c0_26] : memref<9x4x128xbf16, #tpu.memory_space<vmem>>, vector<1x4x128xbf16>
    %26 = vector.shape_cast %25 : vector<1x4x128xbf16> to vector<4x128xbf16>
    %cst_27 = arith.constant dense<0.000000e+00> : vector<128x128xf32>
    %27 = tpu.matmul %24, %26, %cst_27 {dimension_numbers = #tpu.dot_dimension_numbers<[1], [0], [0], [1], [0, 0, 1, 1], [], []>} : vector<128x4xbf16>, vector<4x128xbf16>, vector<128x128xf32> -> vector<128x128xf32>
    %28 = arith.addf %21, %27 : vector<128x128xf32>
    %c0_28 = arith.constant 0 : index
    %c1_29 = arith.constant 1 : index
    %c1_30 = arith.constant 1 : index
    %c0_31 = arith.constant 0 : index
    %29 = vector.load %arg2[%c0_28, %c1_29, %c1_30, %c0_31] : memref<1x10x18x4xbf16, #tpu.memory_space<vmem>>, vector<1x8x16x4xbf16>
    %30 = vector.shape_cast %29 : vector<1x8x16x4xbf16> to vector<8x16x4xbf16>
    %31 = vector.shape_cast %30 : vector<8x16x4xbf16> to vector<128x4xbf16>
    %c4 = arith.constant 4 : index
    %c0_32 = arith.constant 0 : index
    %c0_33 = arith.constant 0 : index
    %32 = vector.load %arg3[%c4, %c0_32, %c0_33] : memref<9x4x128xbf16, #tpu.memory_space<vmem>>, vector<1x4x128xbf16>
    %33 = vector.shape_cast %32 : vector<1x4x128xbf16> to vector<4x128xbf16>
    %cst_34 = arith.constant dense<0.000000e+00> : vector<128x128xf32>
    %34 = tpu.matmul %31, %33, %cst_34 {dimension_numbers = #tpu.dot_dimension_numbers<[1], [0], [0], [1], [0, 0, 1, 1], [], []>} : vector<128x4xbf16>, vector<4x128xbf16>, vector<128x128xf32> -> vector<128x128xf32>
    %35 = arith.addf %28, %34 : vector<128x128xf32>
    %c0_35 = arith.constant 0 : index
    %c1_36 = arith.constant 1 : index
    %c2_37 = arith.constant 2 : index
    %c0_38 = arith.constant 0 : index
    %36 = vector.load %arg2[%c0_35, %c1_36, %c2_37, %c0_38] : memref<1x10x18x4xbf16, #tpu.memory_space<vmem>>, vector<1x8x16x4xbf16>
    %37 = vector.shape_cast %36 : vector<1x8x16x4xbf16> to vector<8x16x4xbf16>
    %38 = vector.shape_cast %37 : vector<8x16x4xbf16> to vector<128x4xbf16>
    %c5 = arith.constant 5 : index
    %c0_39 = arith.constant 0 : index
    %c0_40 = arith.constant 0 : index
    %39 = vector.load %arg3[%c5, %c0_39, %c0_40] : memref<9x4x128xbf16, #tpu.memory_space<vmem>>, vector<1x4x128xbf16>
    %40 = vector.shape_cast %39 : vector<1x4x128xbf16> to vector<4x128xbf16>
    %cst_41 = arith.constant dense<0.000000e+00> : vector<128x128xf32>
    %41 = tpu.matmul %38, %40, %cst_41 {dimension_numbers = #tpu.dot_dimension_numbers<[1], [0], [0], [1], [0, 0, 1, 1], [], []>} : vector<128x4xbf16>, vector<4x128xbf16>, vector<128x128xf32> -> vector<128x128xf32>
    %42 = arith.addf %35, %41 : vector<128x128xf32>
    %c0_42 = arith.constant 0 : index
    %c2_43 = arith.constant 2 : index
    %c0_44 = arith.constant 0 : index
    %c0_45 = arith.constant 0 : index
    %43 = vector.load %arg2[%c0_42, %c2_43, %c0_44, %c0_45] : memref<1x10x18x4xbf16, #tpu.memory_space<vmem>>, vector<1x8x16x4xbf16>
    %44 = vector.shape_cast %43 : vector<1x8x16x4xbf16> to vector<8x16x4xbf16>
    %45 = vector.shape_cast %44 : vector<8x16x4xbf16> to vector<128x4xbf16>
    %c6 = arith.constant 6 : index
    %c0_46 = arith.constant 0 : index
    %c0_47 = arith.constant 0 : index
    %46 = vector.load %arg3[%c6, %c0_46, %c0_47] : memref<9x4x128xbf16, #tpu.memory_space<vmem>>, vector<1x4x128xbf16>
    %47 = vector.shape_cast %46 : vector<1x4x128xbf16> to vector<4x128xbf16>
    %cst_48 = arith.constant dense<0.000000e+00> : vector<128x128xf32>
    %48 = tpu.matmul %45, %47, %cst_48 {dimension_numbers = #tpu.dot_dimension_numbers<[1], [0], [0], [1], [0, 0, 1, 1], [], []>} : vector<128x4xbf16>, vector<4x128xbf16>, vector<128x128xf32> -> vector<128x128xf32>
    %49 = arith.addf %42, %48 : vector<128x128xf32>
    %c0_49 = arith.constant 0 : index
    %c2_50 = arith.constant 2 : index
    %c1_51 = arith.constant 1 : index
    %c0_52 = arith.constant 0 : index
    %50 = vector.load %arg2[%c0_49, %c2_50, %c1_51, %c0_52] : memref<1x10x18x4xbf16, #tpu.memory_space<vmem>>, vector<1x8x16x4xbf16>
    %51 = vector.shape_cast %50 : vector<1x8x16x4xbf16> to vector<8x16x4xbf16>
    %52 = vector.shape_cast %51 : vector<8x16x4xbf16> to vector<128x4xbf16>
    %c7 = arith.constant 7 : index
    %c0_53 = arith.constant 0 : index
    %c0_54 = arith.constant 0 : index
    %53 = vector.load %arg3[%c7, %c0_53, %c0_54] : memref<9x4x128xbf16, #tpu.memory_space<vmem>>, vector<1x4x128xbf16>
    %54 = vector.shape_cast %53 : vector<1x4x128xbf16> to vector<4x128xbf16>
    %cst_55 = arith.constant dense<0.000000e+00> : vector<128x128xf32>
    %55 = tpu.matmul %52, %54, %cst_55 {dimension_numbers = #tpu.dot_dimension_numbers<[1], [0], [0], [1], [0, 0, 1, 1], [], []>} : vector<128x4xbf16>, vector<4x128xbf16>, vector<128x128xf32> -> vector<128x128xf32>
    %56 = arith.addf %49, %55 : vector<128x128xf32>
    %c0_56 = arith.constant 0 : index
    %c2_57 = arith.constant 2 : index
    %c2_58 = arith.constant 2 : index
    %c0_59 = arith.constant 0 : index
    %57 = vector.load %arg2[%c0_56, %c2_57, %c2_58, %c0_59] : memref<1x10x18x4xbf16, #tpu.memory_space<vmem>>, vector<1x8x16x4xbf16>
    %58 = vector.shape_cast %57 : vector<1x8x16x4xbf16> to vector<8x16x4xbf16>
    %59 = vector.shape_cast %58 : vector<8x16x4xbf16> to vector<128x4xbf16>
    %c8 = arith.constant 8 : index
    %c0_60 = arith.constant 0 : index
    %c0_61 = arith.constant 0 : index
    %60 = vector.load %arg3[%c8, %c0_60, %c0_61] : memref<9x4x128xbf16, #tpu.memory_space<vmem>>, vector<1x4x128xbf16>
    %61 = vector.shape_cast %60 : vector<1x4x128xbf16> to vector<4x128xbf16>
    %cst_62 = arith.constant dense<0.000000e+00> : vector<128x128xf32>
    %62 = tpu.matmul %59, %61, %cst_62 {dimension_numbers = #tpu.dot_dimension_numbers<[1], [0], [0], [1], [0, 0, 1, 1], [], []>} : vector<128x4xbf16>, vector<4x128xbf16>, vector<128x128xf32> -> vector<128x128xf32>
    %63 = arith.addf %56, %62 : vector<128x128xf32>
    %64 = vector.shape_cast %63 : vector<128x128xf32> to vector<8x16x128xf32>
    %c0_63 = arith.constant 0 : index
    %c0_64 = arith.constant 0 : index
    %c0_65 = arith.constant 0 : index
    %c0_66 = arith.constant 0 : index
    %65 = vector.load %arg4[%c0_63, %c0_64, %c0_65, %c0_66] : memref<1x8x16x128xf32, #tpu.memory_space<vmem>>, vector<1x8x16x128xf32>
    %66 = vector.shape_cast %65 : vector<1x8x16x128xf32> to vector<8x16x128xf32>
    %67 = vector.shape_cast %64 : vector<8x16x128xf32> to vector<1x8x16x128xf32>
    tpu.vector_store %arg4[%c0_63, %c0_64, %c0_65, %c0_66], %67 {strides = array<i32>} : memref<1x8x16x128xf32, #tpu.memory_space<vmem>>, vector<1x8x16x128xf32>,
    %cst_67 = arith.constant dense<0.000000e+00> : vector<128xf32>
    %68 = vector.multi_reduction <add>, %63, %cst_67 [0] : vector<128x128xf32> to vector<128xf32>
    %69 = vector.shape_cast %68 : vector<128xf32> to vector<1x128xf32>
    %c0_68 = arith.constant 0 : index
    %c0_69 = arith.constant 0 : index
    %c0_70 = arith.constant 0 : index
    %70 = vector.load %arg5[%c0_68, %c0_69, %c0_70] : memref<1x2x128xf32, #tpu.memory_space<vmem>>, vector<1x1x128xf32>
    %71 = vector.shape_cast %70 : vector<1x1x128xf32> to vector<1x128xf32>
    %72 = vector.shape_cast %69 : vector<1x128xf32> to vector<1x1x128xf32>
    tpu.vector_store %arg5[%c0_68, %c0_69, %c0_70], %72 {strides = array<i32>} : memref<1x2x128xf32, #tpu.memory_space<vmem>>, vector<1x1x128xf32>,
    %73 = arith.mulf %63, %63 : vector<128x128xf32>
    %cst_71 = arith.constant dense<0.000000e+00> : vector<128xf32>
    %74 = vector.multi_reduction <add>, %73, %cst_71 [0] : vector<128x128xf32> to vector<128xf32>
    %75 = vector.shape_cast %74 : vector<128xf32> to vector<1x128xf32>
    %c0_72 = arith.constant 0 : index
    %c1_73 = arith.constant 1 : index
    %c0_74 = arith.constant 0 : index
    %76 = vector.load %arg5[%c0_72, %c1_73, %c0_74] : memref<1x2x128xf32, #tpu.memory_space<vmem>>, vector<1x1x128xf32>
    %77 = vector.shape_cast %76 : vector<1x1x128xf32> to vector<1x128xf32>
    %78 = vector.shape_cast %75 : vector<1x128xf32> to vector<1x1x128xf32>
    tpu.vector_store %arg5[%c0_72, %c1_73, %c0_74], %78 {strides = array<i32>} : memref<1x2x128xf32, #tpu.memory_space<vmem>>, vector<1x1x128xf32>,
    return
  }
  func.func @transform_0(%arg0: i32, %arg1: i32) -> (i32, i32, i32, i32) {
    %c2_i32 = arith.constant 2 : i32
    %0 = arith.muli %arg0, %c2_i32 : i32
    %1 = arith.addi %0, %arg1 : i32
    %c0_i32 = arith.constant 0 : i32
    %c0_i32_0 = arith.constant 0 : i32
    %c0_i32_1 = arith.constant 0 : i32
    %c0_i32_2 = arith.constant 0 : i32
    return %1, %c0_i32, %c0_i32_0, %c0_i32_1 : i32, i32, i32, i32
  }
  func.func @transform_1(%arg0: i32, %arg1: i32) -> (i32, i32, i32) {
    %c0_i32 = arith.constant 0 : i32
    %c0_i32_0 = arith.constant 0 : i32
    %c0_i32_1 = arith.constant 0 : i32
    %c0_i32_2 = arith.constant 0 : i32
    return %c0_i32, %c0_i32_0, %c0_i32_1 : i32, i32, i32
  }
  func.func @transform_2(%arg0: i32, %arg1: i32) -> (i32, i32, i32, i32) {
    %c0_i32 = arith.constant 0 : i32
    %c0_i32_0 = arith.constant 0 : i32
    %c0_i32_1 = arith.constant 0 : i32
    return %arg0, %arg1, %c0_i32, %c0_i32_0 : i32, i32, i32, i32
  }
  func.func @transform_3(%arg0: i32, %arg1: i32) -> (i32, i32, i32) {
    %c2_i32 = arith.constant 2 : i32
    %0 = arith.muli %arg0, %c2_i32 : i32
    %1 = arith.addi %0, %arg1 : i32
    %c0_i32 = arith.constant 0 : i32
    %c0_i32_0 = arith.constant 0 : i32
    %c0_i32_1 = arith.constant 0 : i32
    return %1, %c0_i32, %c0_i32_0 : i32, i32, i32
  }
}

</mosaic_0001>

<bundles_post_ra>
// kernel: tpu_custom_call.1
= control target key start
LH: loop header
LB: loop body
LE: loop exit
PB: predicated region body
PF: predicated region fallthrough
CT: control target
= control target key end

     0   :  { %s4992_s0 = inlined_call_operand.vmem [shape: bf16[4,10,18,4], index: 0, kind: input, shape index: {}]   ;;  %s4993_s1 = inlined_call_operand.vmem [shape: bf16[9,4,128], index: 1, kind: input, shape index: {}]   ;;  %s4994_s2 = inlined_call_operand.hbm [shape: f32[2,16,16,128], index: 2, kind: output, shape index: {0}]   ;;  %s4995_s3 = inlined_call_operand.hbm [shape: f32[4,2,128], index: 3, kind: output, shape index: {1}]  }
   0x1   :  { %5003 = sst [smem:[#allocation13_spill]] %s4995_s3 }
   0x2   :  { %9 = vsyncpa [#allocation3], 0 }
   0x3   :  { %11 = vsyncpa [#allocation3 + $0x1], 0 }
   0x4   :  { %12 = vsyncpa [#allocation5], 0 }
   0x5   :  { %14 = vsyncpa [#allocation5 + $0x1], 0  ;;  %s3877_s12 = smov 0   ;;  %s3879_s13 = smov 0  }
   0x6   :  { %s3881_s14 = smov 0   ;;  %s3883_s15 = smov 0  }
   0x7   :  { %s3885_s16 = smov 0   ;;  %s3887_s17 = smov 0  }
   0x8   :  { %s3889_s18 = smov 0   ;;  %s3891_s19 = smov 0  }
   0x9   :  { %s3893_s20 = smov 0   ;;  %s3895_s21 = smov 0  }
   0xa   :  { %s3897_s22 = smov 0  }
   0xb LB: > { %5004 = sst [smem:[#allocation8_spill]] %s3823_s15  ;;  %s2894_s23 = sadd.s32 4294967295, %s3851_s22   ;;  %s3851_s22 = sphi %s3897_s22, %s20_s22   ;;  %s3847_s21 = sphi %s3895_s21, %s5040_s21   ;;  %s3843_s20 = sphi %s3893_s20, %s5039_s20   ;;  %s3839_s19 = sphi %s3891_s19, %s5038_s19   ;;  %s3835_s18 = sphi %s3889_s18, %s5037_s18   ;;  %s3831_s17 = sphi %s3887_s17, %s5036_s17   ;;  %s3827_s16 = sphi %s3885_s16, %s5035_s16   ;;  %s3823_s15 = sphi %s3883_s15, %s5034_s15   ;;  %s3819_s14 = sphi %s3881_s14, %s5033_s14   ;;  %s3815_s13 = sphi %s3879_s13, %s5032_s13   ;;  %s3811_s12 = sphi %s3877_s12, %s5031_s12  }
   0xc   : > { %s2895_s24 = sadd.s32 4294967294, %s3851_s22   ;;  %s29_s25 = sadd.s32 1, %s3843_s20 }
   0xd   : > { %s32_s26 = sadd.s32 1, %s3847_s21  ;;  %p30_p0 = scmp.ge.s32.totalorder %s29_s25, 2 }
   0xe   : > { %s92_s27 = sadd.s32 1, %s3831_s17  ;;  %p102_p1 = scmp.ne.s32.totalorder %s3831_s17, %s3827_s16 }
   0xf   : > { %p3939_p2 = scmp.eq.s32.totalorder %s2894_s23, 3  ;;  %s5042_s25 = smov (%p30_p0, %s29_s25), 0 }
  0x10   : > { %s5044_s26 = smov (!%p30_p0, %s32_s26), %s3847_s21  ;;  %s88_s29 = ssub.s32 %s3843_s20, %s5042_s25 }
  0x11   : > { %p3950_p3 = por %p3939_p2, %p102_p1  ;;  %p34_p4 = scmp.ge.s32.totalorder %s5044_s26, 2 }
  0x12   : > { %p108_p5 = scmp.ne.s32.totalorder %s3827_s16, %s3823_s15  ;;  %p3956_p6 = scmp.eq.s32.totalorder %s2895_s24, 3 }
  0x13   : > { %s2898_s5 = sshll.u32 %s3847_s21, 1  ;;  %s5046_s26 = smov (%p34_p4, %s5044_s26), 0 }
  0x14   : > { %p3965_p7 = por %p3956_p6, %p108_p5  ;;  %s116_s7 = sadd.s32 %s3843_s20, %s2898_s5 }
  0x15   : > { %s87_s8 = ssub.s32 %s3847_s21, %s5046_s26  ;;  %s2899_s9 = sshll.u32 %s5046_s26, 1 }
  0x16   : > { %s89_s10 = sor.u32 %s88_s29, %s87_s8  ;;  %s118_s11 = sadd.s32 %s2899_s9, %s5042_s25 }
  0x17   : > { %p90_p8 = scmp.eq.s32.totalorder %s89_s10, 0  ;;  %s119_s23 = ssub.s32 %s116_s7, %s118_s11 }
  0x18   : > { %p120_p9 = scmp.eq.s32.totalorder %s119_s23, 0  ;;  %s122_s24 = sadd.s32 1, %s3819_s14 }
  0x19   : > { %s3976_s15 = scalar_select %p90_p8, %s3831_s17, %s92_s27  }
  0x1a   : > { %s3979_s3 = scalar_select %p120_p9, %s3819_s14, %s122_s24  }
  0x1b   : > { %p132_p10 = scmp.ne.s32.totalorder %s3819_s14, %s3815_s13  ;;  %p138_p11 = scmp.ne.s32.totalorder %s3815_s13, %s3811_s12 }
  0x1c   : > { %p2902_p12 = scmp.ge.s32.totalorder %s3851_s22, 1  ;;  %p172_p13 = scmp.lt.s32.totalorder %s3851_s22, 5 }
  0x1d   : > { %p3989_p0 = por %p132_p10, %p3939_p2  ;;  %p3995_p1 = por %p138_p11, %p3956_p6 }
  0x1e   : > { %p173_p4 = pnand %p2902_p12, %p172_p13 }
  0x20   : > { %176 = sbr.rel (%p173_p4) target bundleno = 486 (0x1e6), region = 28 }
  0x27   : > { %v2907_v0 = vld [vmem:[%s4993_s1 + $0x2] sm:$0x3]  ;;  %vm487_vm0 = vcmask 1041408   ;;  %v3022_v1 = vld [vmem:[%s4993_s1 + $0x8] sm:$0x3]  ;;  %s2905_s9 = sshll.u32 %s3839_s19, 1 }
  0x28   : > { %3563 = vmatprep.subr.msk.bf16.mxu1 %vm487_vm0, %v2907_v0  ;;  %3567 = vmatprep.subr.msk.bf16.mxu0 %vm487_vm0, %v3022_v1  ;;  %v489_v2 = vsel %vm487_vm0, %v2907_v0, 0  ;;  %v4010_v3 = vsel %vm487_vm0, %v3022_v1, 0  ;;  %s4013_s4 = sadd.s32 %s3835_s18, %s2905_s9  ;;  %v232_v4 = vld [vmem:[%s4993_s1] sm:$0x3]  ;;  %v3055_v5 = vld [vmem:[%s4993_s1 + $0xa] sm:$0x3] }
  0x29   : > { %3272 = vmatpush3.bf16.msra.mxu1 %v489_v2  ;;  %3344 = vmatpush3.bf16.msra.mxu0 %v4010_v3  ;;  %p205_p2 = scmp.lt.s32.totalorder %s4013_s4, 3  ;;  %vm241_vm1 = vsmask.f32 3328  ;;  %vm242_vm2 = vsmask.f32 7440  ;;  %vm462_vm3 = vcmask 31744  }
  0x2a   : > { %3564 = vmatprep.subr.msk.bf16.mxu1 %vm487_vm0, %v232_v4  ;;  %3569 = vmatprep.subr.msk.bf16.mxu0 %vm487_vm0, %v3055_v5  ;;  %v4053_v17 = vsel %vm487_vm0, %v232_v4, 0  ;;  %v4059_v26 = vld [vmem:[%s4993_s1 + $0xc] sm:$0x3]  ;;  %vm4068_vm4 = vmor %vm241_vm1, %vm242_vm2  ;;  %v4076_v37 = vsel %vm487_vm0, %v3055_v5, 0  ;;  %vm776_vm5 = vcmask 1042432   ;;  %vm777_vm6 = vcmask 1046532  }
  0x2b   : > { %s206_s27 = scalar_select %p205_p2, %s4013_s4, 3  ;;  %v4080_v41 = vsel %vm487_vm0, %v4059_v26, 0  ;;  %vm4223_vm7 = vmor %vm776_vm5, %vm777_vm6 }
  0x2c   : > { %s3189_s8 = sshll.u32 %s3835_s18, 4  ;;  %s3183_s28 = sshll.u32 %s3839_s19, 5 }
  0x2d   : > { %s3573_s7 = smul.u32 120, %s206_s27  ;;  %s2766_s10 = sadd.s32 %s3189_s8, %s3183_s28 }
  0x2e   : > { %s3184_s18 = sshll.u32 %s2766_s10, 7  ;;  %s3853_s28 = smov [#allocation2]  }
  0x2f   : > { %s4029_s9 = scalar_lea.vmem %s4992_s0, %s3573_s7  ;;  %s4889_s24 = scalar_lea.hbm %s4994_s2, %s3184_s18 }
  0x30   : > { %v4032_v6 = vld [vmem:[%s4029_s9] sm:$0xf]  ;;  %v4035_v7 = vld [vmem:[%s4029_s9 + $0x4] sm:$0xf]  ;;  %v4038_v8 = vld [vmem:[%s4029_s9 + $0x8] sm:$0x1] }
  0x31   : > { %v245_v9 = vshrl.u32 %v4032_v6, 16  ;;  %v248_v10 = vshll.u32 %v4032_v6, 16  ;;  %v254_v11 = vshll.u32 %v4035_v7, 16  ;;  %v258_v12 = vshrl.u32 %v4035_v7, 16  ;;  %v2998_v13 = vld [vmem:[%s4029_s9 + $0xc] sm:$0xf] }
  0x32   : > { %v264_v14 = vshll.u32 %v4038_v8, 16  ;;  %v4047_v15 = vld [vmem:[%s4029_s9 + $0x10] sm:$0xf]  ;;  %v4050_v16 = vld [vmem:[%s4029_s9 + $0x14] sm:$0x1]  ;;  %v1225_v23 = vshrl.u32 %v2998_v13, 16 }
  0x33   : > { %v247_v18 = vrot.slane %v245_v9, 4  ;;  %v250_v19 = vrot.slane %v248_v10, 5  ;;  %v256_v20 = vrot.slane %v254_v11, 5  ;;  %v260_v21 = vrot.slane %v258_v12, 4  ;;  %v4064_v31 = vld [vmem:[%s4029_s9 + $0xc] sm:$0xf] }
  0x34   : > { %v266_v22 = vrot.slane %v264_v14, 5  ;;  %v1228_v24 = vshll.u32 %v2998_v13, 16  ;;  %v1234_v25 = vshll.u32 %v4047_v15, 16  ;;  %v1238_v29 = vshrl.u32 %v4047_v15, 16  ;;  %v4073_v36 = vld [vmem:[%s4029_s9 + $0x10] sm:$0xf] }
  0x35   : > { %v251_v27 = vor.u32 %v250_v19, %v247_v18  ;;  %v261_v28 = vor.u32 %v260_v21, %v256_v20  ;;  %v1244_v30 = vshll.u32 %v4050_v16, 16  ;;  %v1227_v33 = vrot.slane %v1225_v23, 4  ;;  %v4083_v44 = vld [vmem:[%s4029_s9 + $0x14] sm:$0x1]  ;;  %v3001_v55 = vld [vmem:[%s4029_s9 + $0x18] sm:$0xf] }
  0x36   : > { %v1230_v34 = vrot.slane %v1228_v24, 5  ;;  %v1236_v35 = vrot.slane %v1234_v25, 5  ;;  %v1240_v40 = vrot.slane %v1238_v29, 4  ;;  %v269_v45 = vshrl.u32 %v4064_v31, 16  ;;  %v4096_v60 = vld [vmem:[%s4029_s9 + $0x1c] sm:$0xf] }
  0x37   : > { %v252_v38 = vrot.slane %v251_v27, 4  ;;  %v262_v39 = vrot.slane %v261_v28, 4  ;;  %v1246_v43 = vrot.slane %v1244_v30, 5  ;;  %v272_v46 = vshll.u32 %v4064_v31, 16  ;;  %v4104_v1 = vld [vmem:[%s4029_s9 + $0x20] sm:$0x1] }
  0x38   : > { %v1231_v42 = vor.u32 %v1230_v34, %v1227_v33  ;;  %v1241_v49 = vor.u32 %v1240_v40, %v1236_v35  ;;  %v278_v50 = vshll.u32 %v4073_v36, 16  ;;  %v271_v53 = vrot.slane %v269_v45, 4  ;;  %v4112_v21 = vld [vmem:[%s4029_s9 + $0x18] sm:$0xf]  ;;  %v4119_v27 = vld [vmem:[%s4029_s9 + $0x1c] sm:$0xf] }
  0x39   : > { %v257_v47 = vsel %vm4068_vm4, %v252_v38, %v256_v20  ;;  %v267_v48 = vsel %vm4068_vm4, %v262_v39, %v266_v22  ;;  %v274_v54 = vrot.slane %v272_v46, 5  ;;  %v282_v58 = vshrl.u32 %v4073_v36, 16  ;;  %v4127_v38 = vld [vmem:[%s4029_s9 + $0x20] sm:$0x1]  ;;  %s3705_s10 = sshll.u32 %s3853_s28, 4  ;;  %s3706_s10 = int_to_ptr.vmem [resolvable:$false] %s3705_s10 }
  0x3a   : > { %v2908_v51 = vcombine.low %v257_v47, %v267_v48  ;;  %v1232_v52 = vrot.slane %v1231_v42, 4  ;;  %v1242_v56 = vrot.slane %v1241_v49, 4  ;;  %v280_v57 = vrot.slane %v278_v50, 5  ;;  %v3004_v47 = vld [vmem:[%s4029_s9 + $0x24] sm:$0xf]  ;;  %s3707_s18 = scalar_lea.vmem %s3706_s10, 4096 }
  0x3b   : > { %v288_v59 = vshll.u32 %v4083_v44, 16  ;;  %v1616_v62 = vrot.slane %v4047_v15, 5  ;;  %v1619_v63 = vrot.slane %v4050_v16, 5  ;;  %v275_v0 = vor.u32 %v274_v54, %v271_v53 }
  0x3c   : > { %3273 = vmatprep.mubr.msk.bf16.mxu1 %vm462_vm3, %v2908_v51  ;;  %v1237_v61 = vsel %vm4068_vm4, %v1232_v52, %v1236_v35  ;;  %v1247_v2 = vsel %vm4068_vm4, %v1242_v56, %v1246_v43  ;;  %v284_v4 = vrot.slane %v282_v58, 4  ;;  %v1249_v9 = vshrl.u32 %v3001_v55, 16  ;;  %v4137_v52 = vld [vmem:[%s4029_s9 + $0x28] sm:$0xf] }
  0x3d   : > { %v290_v5 = vrot.slane %v288_v59, 5  ;;  %v3023_v10 = vcombine.low %v1237_v61, %v1247_v2  ;;  %v276_v11 = vrot.slane %v275_v0, 4  ;;  %v1252_v12 = vshll.u32 %v3001_v55, 16  ;;  %v4149_v61 = vld [vmem:[%s4029_s9 + $0x2c] sm:$0x1] }
  0x3e   : > { %v1258_v13 = vshll.u32 %v4096_v60, 16  ;;  %v285_v14 = vor.u32 %v284_v4, %v280_v57  ;;  %v1251_v18 = vrot.slane %v1249_v9, 4  ;;  %v1262_v19 = vshrl.u32 %v4096_v60, 16 }
  0x3f   : > { %v1268_v20 = vshll.u32 %v4104_v1, 16  ;;  %3345 = vmatprep.mubr.msk.bf16.mxu0 %vm462_vm3, %v3023_v10  ;;  %v281_v22 = vsel %vm4068_vm4, %v276_v11, %v280_v57  ;;  %v1254_v23 = vrot.slane %v1252_v12, 5  ;;  %v1623_v25 = vrot.slane %v4096_v60, 5  ;;  %v4143_v57 = vld [vmem:[%s4993_s1 + $0x4] sm:$0x3] }
  0x40   : > { %v1260_v24 = vrot.slane %v1258_v13, 5  ;;  %v286_v28 = vrot.slane %v285_v14, 4  ;;  %v1264_v29 = vrot.slane %v1262_v19, 4  ;;  %v1626_v33 = vrot.slane %v4104_v1, 5  ;;  %v4156_v11 = vld [vmem:[%s4029_s9 + $0x24] sm:$0xf] }
  0x41   : > { %v1270_v30 = vrot.slane %v1268_v20, 5  ;;  %v1255_v34 = vor.u32 %v1254_v23, %v1251_v18  ;;  %v4124_v35 = vrot.slane %v1623_v25, 4  ;;  %v293_v39 = vshrl.u32 %v4112_v21, 16  ;;  %v4159_v19 = vld [vmem:[%s4029_s9 + $0x28] sm:$0xf] }
  0x42   : > { %v296_v40 = vshll.u32 %v4112_v21, 16  ;;  %v291_v42 = vsel %vm4068_vm4, %v286_v28, %v290_v5  ;;  %v1265_v43 = vor.u32 %v1264_v29, %v1260_v24  ;;  %v302_v45 = vshll.u32 %v4119_v27, 16  ;;  %v4169_v29 = vld [vmem:[%s4029_s9 + $0x2c] sm:$0x1] }
  0x43   : > { %v306_v46 = vshrl.u32 %v4119_v27, 16  ;;  %v2909_v48 = vcombine.low %v281_v22, %v291_v42  ;;  %v1256_v49 = vrot.slane %v1255_v34, 4  ;;  %v295_v50 = vrot.slane %v293_v39, 4 }
  0x44   : > { %v298_v51 = vrot.slane %v296_v40, 5  ;;  %v1266_v53 = vrot.slane %v1265_v43, 4  ;;  %v304_v54 = vrot.slane %v302_v45, 5  ;;  %v312_v56 = vshll.u32 %v4127_v38, 16  ;;  %v3007_v45 = vld [vmem:[%s4029_s9 + $0x30] sm:$0xf] }
  0x45   : > { %v308_v55 = vrot.slane %v306_v46, 4  ;;  %3274 = vmatmul.mubr.msk.bf16.vlgmr.msra.gmra.mrb[0].mxu1 %vm462_vm3, %v2909_v48  ;;  %v1261_v58 = vsel %vm4068_vm4, %v1256_v49, %v1260_v24  ;;  %v1273_v0 = vshrl.u32 %v3004_v47, 16  ;;  %v1276_v2 = vshll.u32 %v3004_v47, 16 }
  0x46   : > { %v299_v59 = vor.u32 %v298_v51, %v295_v50  ;;  %3290 = vmatpush3.bf16.msra.mxu1 %v4053_v17  ;;  %v1271_v4 = vsel %vm4068_vm4, %v1266_v53, %v1270_v30  ;;  %v314_v9 = vrot.slane %v312_v56, 5  ;;  %v1282_v10 = vshll.u32 %v4137_v52, 16  ;;  %v4179_v50 = vld [vmem:[%s4029_s9 + $0x34] sm:$0xf] }
  0x47   : > { %v309_v5 = vor.u32 %v308_v55, %v304_v54  ;;  %v3024_v12 = vcombine.low %v1261_v58, %v1271_v4  ;;  %v1275_v14 = vrot.slane %v1273_v0, 4  ;;  %v1278_v18 = vrot.slane %v1276_v2, 5  ;;  %3565 = vmatprep.subr.msk.bf16.mxu1 %vm487_vm0, %v4143_v57  ;;  %v4189_v58 = vld [vmem:[%s4029_s9 + $0x38] sm:$0x1] }
  0x48   : > { %v300_v13 = vrot.slane %v299_v59, 4  ;;  %v1284_v20 = vrot.slane %v1282_v10, 5  ;;  %v1286_v22 = vshrl.u32 %v4137_v52, 16  ;;  %v1292_v23 = vshll.u32 %v4149_v61, 16 }
  0x49   : > { %v310_v17 = vrot.slane %v309_v5, 4  ;;  %3346 = vmatmul.mubr.msk.bf16.vlgmr.msra.gmra.mrb[0].mxu0 %vm462_vm3, %v3024_v12  ;;  %v1279_v28 = vor.u32 %v1278_v18, %v1275_v14  ;;  %v317_v30 = vshrl.u32 %v4156_v11, 16  ;;  %v320_v34 = vshll.u32 %v4156_v11, 16  ;;  %v4194_v14 = vld [vmem:[%s4029_s9 + $0x30] sm:$0xf] }
  0x4a   : > { %v305_v24 = vsel %vm4068_vm4, %v300_v13, %v304_v54  ;;  %3362 = vmatpush3.bf16.msra.mxu0 %v4076_v37  ;;  %v1288_v40 = vrot.slane %v1286_v22, 4  ;;  %v1294_v42 = vrot.slane %v1292_v23, 5  ;;  %v326_v43 = vshll.u32 %v4159_v19, 16  ;;  %v4200_v23 = vld [vmem:[%s4029_s9 + $0x34] sm:$0xf] }
  0x4b   : > { %v315_v39 = vsel %vm4068_vm4, %v310_v17, %v314_v9  ;;  %v1280_v47 = vrot.slane %v1279_v28, 4  ;;  %v319_v48 = vrot.slane %v317_v30, 4  ;;  %v322_v49 = vrot.slane %v320_v34, 5  ;;  %3570 = vmatprep.subr.msk.bf16.mxu0 %vm487_vm0, %v4059_v26 }
  0x4c   : > { %v2910_v46 = vcombine.low %v305_v24, %v315_v39  ;;  %v1289_v37 = vor.u32 %v1288_v40, %v1284_v20  ;;  %v328_v51 = vrot.slane %v326_v43, 5  ;;  %v330_v53 = vshrl.u32 %v4159_v19, 16  ;;  %v4205_v39 = vld [vmem:[%s4029_s9 + $0x38] sm:$0x1] }
  0x4d   : > { %v336_v54 = vshll.u32 %v4169_v29, 16  ;;  %v1285_v55 = vsel %vm4068_vm4, %v1280_v47, %v1284_v20  ;;  %v323_v56 = vor.u32 %v322_v49, %v319_v48  ;;  %v1297_v59 = vshrl.u32 %v3007_v45, 16 }
  0x4e   : > { %3277 = vmatprep.mubr.msk.bf16.mxu1 %vm462_vm3, %v2910_v46  ;;  %v1300_v0 = vshll.u32 %v3007_v45, 16  ;;  %v1290_v2 = vrot.slane %v1289_v37, 4  ;;  %v332_v26 = vrot.slane %v330_v53, 4  ;;  %v1306_v5 = vshll.u32 %v4179_v50, 16  ;;  %v3039_v37 = vld [vmem:[%s4029_s9 + $0xc] sm:$0xe] }
  0x4f   : > { %v338_v4 = vrot.slane %v336_v54, 5  ;;  %v324_v9 = vrot.slane %v323_v56, 4  ;;  %v1299_v10 = vrot.slane %v1297_v59, 4  ;;  %v1310_v13 = vshrl.u32 %v4179_v50, 16  ;;  %v4217_v56 = vld [vmem:[%s4029_s9 + $0x3c] sm:$0xf] }
  0x50   : > { %v1302_v12 = vrot.slane %v1300_v0, 5  ;;  %v1295_v18 = vsel %vm4068_vm4, %v1290_v2, %v1294_v42  ;;  %v333_v17 = vor.u32 %v332_v26, %v328_v51  ;;  %v1308_v20 = vrot.slane %v1306_v5, 5 }
  0x51   : > { %v1316_v22 = vshll.u32 %v4189_v58, 16  ;;  %v3025_v24 = vcombine.low %v1285_v55, %v1295_v18  ;;  %v329_v28 = vsel %vm4068_vm4, %v324_v9, %v328_v51  ;;  %v1312_v34 = vrot.slane %v1310_v13, 4  ;;  %v4231_v18 = vld [vmem:[%s4029_s9 + $0x44] sm:$0x1] }
  0x52   : > { %v1303_v30 = vor.u32 %v1302_v12, %v1299_v10  ;;  %v334_v40 = vrot.slane %v333_v17, 4  ;;  %v341_v42 = vshrl.u32 %v4194_v14, 16  ;;  %v344_v45 = vshll.u32 %v4194_v14, 16  ;;  %v3040_v17 = vld [vmem:[%s4029_s9 + $0x18] sm:$0xe] }
  0x53   : > { %v1318_v43 = vrot.slane %v1316_v22, 5  ;;  %3349 = vmatprep.mubr.msk.bf16.mxu0 %vm462_vm3, %v3025_v24  ;;  %v1313_v47 = vor.u32 %v1312_v34, %v1308_v20  ;;  %v350_v48 = vshll.u32 %v4200_v23, 16  ;;  %v354_v49 = vshrl.u32 %v4200_v23, 16 }
  0x54   : > { %v1304_v46 = vrot.slane %v1303_v30, 4  ;;  %v339_v51 = vsel %vm4068_vm4, %v334_v40, %v338_v4  ;;  %v343_v53 = vrot.slane %v341_v42, 4  ;;  %v346_v54 = vrot.slane %v344_v45, 5  ;;  %v4228_v4 = vld [vmem:[%s4029_s9 + $0x40] sm:$0xf] }
  0x55   : > { %v360_v55 = vshll.u32 %v4205_v39, 16  ;;  %v2911_v59 = vcombine.low %v329_v28, %v339_v51  ;;  %v1314_v2 = vrot.slane %v1313_v47, 4  ;;  %v352_v26 = vrot.slane %v350_v48, 5  ;;  %v4242_v30 = vld [vmem:[%s4029_s9 + $0x48] sm:$0xf] }
  0x56   : > { %v1309_v0 = vsel %vm4068_vm4, %v1304_v46, %v1308_v20  ;;  %v347_v9 = vor.u32 %v346_v54, %v343_v53  ;;  %v356_v10 = vrot.slane %v354_v49, 4  ;;  %v3047_v13 = vrot.slane %v3039_v37, 9 }
  0x57   : > { %v362_v12 = vrot.slane %v360_v55, 5  ;;  %3278 = vmatmul.mubr.msk.bf16.gmra.mrb[4].mxu1 %vm462_vm3, %v2911_v59  ;;  %v1319_v20 = vsel %vm4068_vm4, %v1314_v2, %v1318_v43  ;;  %v1618_v22 = vrot.slane %v1616_v62, 4  ;;  %v365_v24 = vshrl.u32 %v4217_v56, 16  ;;  %v4262_v55 = vld [vmem:[%s4029_s9 + $0x50] sm:$0x1] }
  0x58   : > { %v368_v28 = vshll.u32 %v4217_v56, 16  ;;  %v3026_v34 = vcombine.low %v1309_v0, %v1319_v20  ;;  %v348_v40 = vrot.slane %v347_v9, 4  ;;  %v357_v42 = vor.u32 %v356_v10, %v352_v26 }
  0x59   : > { %v1617_v45 = vsel %vm4223_vm7, %v3047_v13, %v1616_v62  ;;  %v1620_v43 = vsel %vm4223_vm7, %v1618_v22, %v1619_v63  ;;  %v367_v46 = vrot.slane %v365_v24, 4  ;;  %v374_v48 = vshll.u32 %v4228_v4, 16  ;;  %v4258_v62 = vld [vmem:[%s4029_s9 + $0x4c] sm:$0xf] }
  0x5a   : > { %v370_v47 = vrot.slane %v368_v28, 5  ;;  %3350 = vmatmul.mubr.msk.bf16.gmra.mrb[4].mxu0 %vm462_vm3, %v3026_v34  ;;  %v353_v49 = vsel %vm4068_vm4, %v348_v40, %v352_v26  ;;  %v358_v37 = vrot.slane %v357_v42, 4  ;;  %v3056_v15 = vcombine.low %v1617_v45, %v1620_v43  ;;  %v4280_v28 = vld [vmem:[%s4029_s9 + $0x54] sm:$0xf]  ;;  %v4291_v34 = vld [vmem:[%s4993_s1 + $0xe] sm:$0x3] }
  0x5b   : > { %v378_v51 = vshrl.u32 %v4228_v4, 16  ;;  %v376_v53 = vrot.slane %v374_v48, 5  ;;  %v384_v63 = vshll.u32 %v4231_v18, 16  ;;  %v3048_v54 = vrot.slane %v3040_v17, 9 }
  0x5c   : > { %v371_v16 = vor.u32 %v370_v47, %v367_v46  ;;  %v363_v59 = vsel %vm4068_vm4, %v358_v37, %v362_v12  ;;  %3363 = vmatprep.mubr.msk.bf16.mxu0 %vm462_vm3, %v3056_v15  ;;  %v1627_v2 = vsel %vm4223_vm7, %v4124_v35, %v1626_v33  ;;  %v389_v26 = vshrl.u32 %v4242_v30, 16  ;;  %v3041_v12 = vld [vmem:[%s4029_s9 + $0x24] sm:$0xe]  ;;  %v4296_v37 = vld [vmem:[%s4029_s9 + $0x58] sm:$0xf] }
  0x5d   : > { %v380_v0 = vrot.slane %v378_v51, 4  ;;  %v2912_v9 = vcombine.low %v353_v49, %v363_v59  ;;  %v386_v13 = vrot.slane %v384_v63, 5  ;;  %v1624_v17 = vsel %vm4223_vm7, %v3048_v54, %v1623_v25  ;;  %v4305_v54 = vld [vmem:[%s4029_s9 + $0x5c] sm:$0x1] }
  0x5e   : > { %v372_v10 = vrot.slane %v371_v16, 4  ;;  %v3057_v22 = vcombine.low %v1624_v17, %v1627_v2  ;;  %v391_v24 = vrot.slane %v389_v26, 4  ;;  %v392_v1 = vshll.u32 %v4242_v30, 16 }
  0x5f   : > { %v381_v20 = vor.u32 %v380_v0, %v376_v53  ;;  %3281 = vmatprep.mubr.msk.bf16.mxu1 %vm462_vm3, %v2912_v9  ;;  %v398_v35 = vshll.u32 %v4258_v62, 16  ;;  %v402_v60 = vshrl.u32 %v4258_v62, 16  ;;  %v408_v25 = vshll.u32 %v4262_v55, 16 }
  0x60   : > { %v377_v33 = vsel %vm4068_vm4, %v372_v10, %v376_v53  ;;  %v394_v42 = vrot.slane %v392_v1, 5  ;;  %v3049_v45 = vrot.slane %v3041_v12, 9  ;;  %v1630_v43 = vrot.slane %v4137_v52, 5  ;;  %v3042_v10 = vld [vmem:[%s4029_s9 + $0x30] sm:$0xe] }
  0x61   : > { %v382_v40 = vrot.slane %v381_v20, 4  ;;  %v400_v46 = vrot.slane %v398_v35, 5  ;;  %v404_v47 = vrot.slane %v402_v60, 4  ;;  %v410_v48 = vrot.slane %v408_v25, 5 }
  0x62   : > { %v1633_v49 = vrot.slane %v4149_v61, 5  ;;  %3364 = vmatmul.mubr.msk.bf16.vlgmr.msra.gmra.mrb[0].mxu0 %vm462_vm3, %v3057_v22  ;;  %v395_v51 = vor.u32 %v394_v42, %v391_v24  ;;  %v1631_v16 = vsel %vm4223_vm7, %v3049_v45, %v1630_v43  ;;  %v1632_v53 = vrot.slane %v1630_v43, 4  ;;  %v4326_v42 = vld [vmem:[%s4029_s9 + $0x40] sm:$0xf]  ;;  %v4329_v45 = vld [vmem:[%s4029_s9 + $0x44] sm:$0x1] }
  0x63   : > { %v387_v15 = vsel %vm4068_vm4, %v382_v40, %v386_v13  ;;  %3380 = vmatpush3.bf16.msra.mxu0 %v4080_v41  ;;  %v405_v52 = vor.u32 %v404_v47, %v400_v46  ;;  %v413_v61 = vshrl.u32 %v4280_v28, 16  ;;  %v416_v59 = vshll.u32 %v4280_v28, 16 }
  0x64   : > { %v2913_v63 = vcombine.low %v377_v33, %v387_v15  ;;  %v396_v0 = vrot.slane %v395_v51, 4  ;;  %v1634_v2 = vsel %vm4223_vm7, %v1632_v53, %v1633_v49  ;;  %v422_v26 = vshll.u32 %v4296_v37, 16  ;;  %3571 = vmatprep.subr.msk.bf16.mxu0 %vm487_vm0, %v4291_v34  ;;  %v3043_v33 = vld [vmem:[%s4029_s9 + $0x3c] sm:$0xe] }
  0x65   : > { %v426_v9 = vshrl.u32 %v4296_v37, 16  ;;  %v406_v41 = vrot.slane %v405_v52, 4  ;;  %v3058_v13 = vcombine.low %v1631_v16, %v1634_v2  ;;  %v415_v17 = vrot.slane %v413_v61, 4  ;;  %v3044_v2 = vld [vmem:[%s4029_s9 + $0x48] sm:$0xe] }
  0x66   : > { %3282 = vmatmul.mubr.msk.bf16.gmra.mrb[8].mxu1 %vm462_vm3, %v2913_v63  ;;  %v418_v12 = vrot.slane %v416_v59, 5  ;;  %v401_v20 = vsel %vm4068_vm4, %v396_v0, %v400_v46  ;;  %v424_v22 = vrot.slane %v422_v26, 5  ;;  %v432_v1 = vshll.u32 %v4305_v54, 16  ;;  %v4344_v59 = vld [vmem:[%s4029_s9 + $0x4c] sm:$0xf] }
  0x67   : > { %v428_v24 = vrot.slane %v426_v9, 4  ;;  %v411_v35 = vsel %vm4068_vm4, %v406_v41, %v410_v48  ;;  %3367 = vmatprep.mubr.msk.bf16.mxu0 %vm462_vm3, %v3058_v13  ;;  %v3050_v25 = vrot.slane %v3042_v10, 9  ;;  %v1637_v40 = vrot.slane %v4179_v50, 5  ;;  %v4347_v0 = vld [vmem:[%s4029_s9 + $0x50] sm:$0x1] }
  0x68   : > { %v419_v60 = vor.u32 %v418_v12, %v415_v17  ;;  %v2914_v43 = vcombine.low %v401_v20, %v411_v35  ;;  %v434_v47 = vrot.slane %v432_v1, 5  ;;  %v1640_v49 = vrot.slane %v4189_v58, 5  ;;  %v4355_v17 = vld [vmem:[%s4029_s9 + $0x58] sm:$0xf]  ;;  %v4358_v12 = vld [vmem:[%s4029_s9 + $0x5c] sm:$0x1] }
  0x69   : > { %v429_v46 = vor.u32 %v428_v24, %v424_v22  ;;  %v1638_v48 = vsel %vm4223_vm7, %v3050_v25, %v1637_v40  ;;  %v1639_v51 = vrot.slane %v1637_v40, 4  ;;  %v3051_v16 = vrot.slane %v3043_v33, 9  ;;  %5015 = vst [vmem:[#allocation9_spill] sm:$0xff] %v4358_v12  ;;  %v4368_v35 = vld [vmem:[%s4029_s9 + $0x64] sm:$0xf] }
  0x6a   : > { %v420_v15 = vrot.slane %v419_v60, 4  ;;  %3285 = vmatprep.mubr.msk.bf16.mxu1 %vm462_vm3, %v2914_v43  ;;  %v1644_v53 = vrot.slane %v4326_v42, 5  ;;  %v1647_v63 = vrot.slane %v4329_v45, 5  ;;  %v2924_v61 = vcombine.low %v4032_v6, %v4035_v7  ;;  %v3045_v6 = vld [vmem:[%s4029_s9 + $0x54] sm:$0xe]  ;;  %5016 = vst [vmem:[#allocation10_spill] sm:$0xff] %v4368_v35 }
  0x6b   : > { %v430_v50 = vrot.slane %v429_v46, 4  ;;  %v1641_v58 = vsel %vm4223_vm7, %v1639_v51, %v1640_v49  ;;  %v1651_v24 = vrot.slane %v4344_v59, 5  ;;  %v1654_v1 = vrot.slane %v4347_v0, 5  ;;  %v4371_v60 = vld [vmem:[%s4029_s9 + $0x68] sm:$0x1] }
  0x6c   : > { %v425_v52 = vsel %vm4068_vm4, %v420_v15, %v424_v22  ;;  %v3059_v9 = vcombine.low %v1638_v48, %v1641_v58  ;;  %v1645_v10 = vsel %vm4223_vm7, %v3051_v16, %v1644_v53  ;;  %v1646_v41 = vrot.slane %v1644_v53, 4  ;;  %5017 = vst [vmem:[#allocation11_spill] sm:$0xff] %v4371_v60 }
  0x6d   : > { %v435_v26 = vsel %vm4068_vm4, %v430_v50, %v434_v47  ;;  %v3052_v22 = vrot.slane %v3044_v2, 9  ;;  %v1653_v40 = vrot.slane %v1651_v24, 4  ;;  %v3053_v43 = vrot.slane %v3045_v6, 9  ;;  %v3046_v47 = vld [vmem:[%s4029_s9 + $0x60] sm:$0xe] }
  0x6e   : > { %v2915_v13 = vcombine.low %v425_v52, %v435_v26  ;;  %3368 = vmatmul.mubr.msk.bf16.gmra.mrb[4].mxu0 %vm462_vm3, %v3059_v9  ;;  %v1648_v20 = vsel %vm4223_vm7, %v1646_v41, %v1647_v63  ;;  %v1658_v46 = vrot.slane %v4355_v17, 5  ;;  %v788_v49 = vrot.slane %v4073_v36, 5  ;;  %v754_v2 = vld [vmem:[%s4029_s9 + $0x18] sm:$0xe]  ;;  %v4403_v6 = vld [vmem:[%s4993_s1 + $0x6] sm:$0x3] }
  0x6f   : > { %v3060_v33 = vcombine.low %v1645_v10, %v1648_v20  ;;  %v1652_v25 = vsel %vm4223_vm7, %v3052_v22, %v1651_v24  ;;  %v1661_v15 = vrot.slane %v4358_v12, 5  ;;  %v1655_v48 = vsel %vm4223_vm7, %v1653_v40, %v1654_v1  ;;  %v756_v1 = vld [vmem:[%s4029_s9 + $0x30] sm:$0xe] }
  0x70   : > { %3286 = vmatmul.mubr.msk.bf16.gmra.mrb[12].mxu1 %vm462_vm3, %v2915_v13  ;;  %v1659_v51 = vsel %vm4223_vm7, %v3053_v43, %v1658_v46  ;;  %v1660_v16 = vrot.slane %v1658_v46, 4  ;;  %v1665_v50 = vrot.slane %v4368_v35, 5  ;;  %v2925_v53 = vcombine.low %v4064_v31, %v4073_v36  ;;  %v755_v36 = vld [vmem:[%s4029_s9 + $0x24] sm:$0xe]  ;;  %v4677_v12 = vld [vmem:[%s4029_s9 + $0x70] sm:$0xf] }
  0x71   : > { %3291 = vmatprep.mubr.msk.bf16.mxu1 %vm462_vm3, %v2924_v61  ;;  %3371 = vmatprep.mubr.msk.bf16.mxu0 %vm462_vm3, %v3060_v33  ;;  %v3061_v63 = vcombine.low %v1652_v25, %v1655_v48  ;;  %v3054_v52 = vrot.slane %v3046_v47, 9  ;;  %v1668_v58 = vrot.slane %v4371_v60, 5  ;;  %v753_v61 = vld [vmem:[%s4029_s9 + $0xc] sm:$0xe]  ;;  %v791_v26 = vrot.slane %v4083_v44, 5 }
  0x72   : > { %v2926_v9 = vcombine.low %v4112_v21, %v4119_v27  ;;  %v1662_v10 = vsel %vm4223_vm7, %v1660_v16, %v1661_v15  ;;  %v1667_v41 = vrot.slane %v1665_v50, 4  ;;  %v886_v13 = vsel %vm487_vm0, %v4143_v57, 0  ;;  %v3681_v16 = vld [vmem:[%s4029_s9 + $0x18] sm:$0xff]   ;;  %v4649_v60 = vld [vmem:[%s4029_s9 + $0x64] sm:$0xf] }
  0x73   : > { %v3062_v31 = vcombine.low %v1659_v51, %v1662_v10  ;;  %v2941_v44 = vrot.slane %v753_v61, 9  ;;  %v790_v20 = vrot.slane %v788_v49, 4  ;;  %v2942_v21 = vrot.slane %v754_v2, 9  ;;  %5018 = vst [vmem:[#allocation12_spill] sm:$0xff] %v4649_v60 }
  0x74   : > { %v1666_v22 = vsel %vm4223_vm7, %v3054_v52, %v1665_v50  ;;  %v1669_v57 = vsel %vm4223_vm7, %v1667_v41, %v1668_v58  ;;  %v795_v24 = vrot.slane %v4119_v27, 5  ;;  %v798_v40 = vrot.slane %v4127_v38, 5 }
  0x75   : > { %v4416_v33 = vsel %vm4223_vm7, %v2941_v44, %v788_v49  ;;  %v4420_v25 = vsel %vm4223_vm7, %v790_v20, %v791_v26  ;;  %v2943_v43 = vrot.slane %v755_v36, 9  ;;  %v3063_v49 = vcombine.low %v1666_v22, %v1669_v57  ;;  %v3105_v26 = vld [vmem:[%s4029_s9 + $0x18] sm:$0xf]  ;;  %v3683_v57 = vld [vmem:[%s4029_s9 + $0x24] sm:$0xff]  }
  0x76   : > { %3372 = vmatmul.mubr.msk.bf16.gmra.mrb[8].mxu0 %vm462_vm3, %v3061_v63  ;;  %v2950_v27 = vcombine.low %v4416_v33, %v4420_v25  ;;  %v4429_v46 = vsel %vm4223_vm7, %v2942_v21, %v795_v24  ;;  %v797_v47 = vrot.slane %v795_v24, 4  ;;  %v802_v15 = vrot.slane %v4159_v19, 5 }
  0x77   : > { %3375 = vmatprep.mubr.msk.bf16.mxu0 %vm462_vm3, %v3062_v31  ;;  %v805_v48 = vrot.slane %v4169_v29, 5  ;;  %v2944_v38 = vrot.slane %v756_v1, 9  ;;  %v2927_v51 = vcombine.low %v4156_v11, %v4159_v19  ;;  %v812_v63 = vrot.slane %v4205_v39, 5  ;;  %v757_v19 = vld [vmem:[%s4029_s9 + $0x3c] sm:$0xe] }
  0x78   : > { %3292 = vmatmul.mubr.msk.bf16.vlgmr.msra.gmra.mrb[0].mxu1 %vm462_vm3, %v2925_v53  ;;  %v4438_v50 = vsel %vm4223_vm7, %v797_v47, %v798_v40  ;;  %v809_v53 = vrot.slane %v4200_v23, 5  ;;  %v2928_v52 = vcombine.low %v4194_v14, %v4200_v23  ;;  %v4448_v58 = vsel %vm4223_vm7, %v2943_v43, %v802_v15  ;;  %v752_v14 = vld [vmem:[%s4029_s9] sm:$0xe]  ;;  %v4476_v31 = vld [vmem:[%s4029_s9 + $0x1c] sm:$0xf] }
  0x79   : > { %3308 = vmatpush3.bf16.msra.mxu1 %v886_v13  ;;  %3295 = vmatprep.mubr.msk.bf16.mxu1 %vm462_vm3, %v2926_v9  ;;  %v2951_v29 = vcombine.low %v4429_v46, %v4438_v50  ;;  %v804_v11 = vrot.slane %v802_v15, 4  ;;  %v781_v61 = vrot.slane %v4035_v7, 5  ;;  %v2945_v10 = vrot.slane %v757_v19, 9  ;;  %v758_v1 = vld [vmem:[%s4029_s9 + $0x48] sm:$0xe] }
  0x7a   : > { %3566 = vmatprep.subr.msk.bf16.mxu1 %vm487_vm0, %v4403_v6  ;;  %v4454_v2 = vsel %vm4223_vm7, %v2944_v38, %v809_v53  ;;  %v811_v39 = vrot.slane %v809_v53, 4  ;;  %v784_v41 = vrot.slane %v4038_v8, 5  ;;  %v2940_v36 = vrot.slane %v752_v14, 9  ;;  %v4502_v38 = vld [vmem:[%s4993_s1 + $0x10] sm:$0x3] }
  0x7b   : > { %v4460_v23 = vsel %vm4223_vm7, %v804_v11, %v805_v48  ;;  %v783_v44 = vrot.slane %v781_v61, 4  ;;  %v816_v20 = vrot.slane %v4228_v4, 5  ;;  %v819_v21 = vrot.slane %v4231_v18, 5  ;;  %v4523_v14 = vld [vmem:[%s4029_s9 + $0x28] sm:$0xf] }
  0x7c   : > { %v4469_v9 = vsel %vm4223_vm7, %v811_v39, %v812_v63  ;;  %v2929_v22 = vcombine.low %v4217_v56, %v4228_v4  ;;  %v2060_v24 = vshrl.u32 %v3105_v26, 16  ;;  %v2063_v8 = vshll.u32 %v3105_v26, 16  ;;  %v3685_v4 = vld [vmem:[%s4029_s9 + $0x30] sm:$0xff]   ;;  %v4625_v46 = vld [vmem:[%s4029_s9 + $0x44] sm:$0x1] }
  0x7d   : > { %v2069_v40 = vshll.u32 %v4476_v31, 16  ;;  %v2073_v43 = vshrl.u32 %v4476_v31, 16  ;;  %v4488_v47 = vsel %vm4223_vm7, %v2945_v10, %v816_v20  ;;  %v2302_v18 = vsel %vm487_vm0, %v4291_v34, 0  ;;  %v3123_v7 = vld [vmem:[%s4029_s9 + $0x60] sm:$0xf] }
  0x7e   : > { %3376 = vmatmul.mubr.msk.bf16.gmra.mrb[12].mxu0 %vm462_vm3, %v3063_v49  ;;  %v818_v49 = vrot.slane %v816_v20, 4  ;;  %v2930_v56 = vcombine.low %v4242_v30, %v4258_v62  ;;  %v782_v15 = vsel %vm4223_vm7, %v2940_v36, %v781_v61  ;;  %v785_v48 = vsel %vm4223_vm7, %v783_v44, %v784_v41  ;;  %v4510_v30 = vld [vmem:[%s4029_s9 + $0x20] sm:$0x1]  ;;  %v3108_v61 = vld [vmem:[%s4029_s9 + $0x24] sm:$0xf] }
  0x7f   : > { %3381 = vmatprep.mubr.msk.bf16.mxu0 %vm462_vm3, %v3681_v16  ;;  %v2946_v34 = vrot.slane %v758_v1, 9  ;;  %v2062_v16 = vrot.slane %v2060_v24, 4  ;;  %v2065_v53 = vrot.slane %v2063_v8, 5  ;;  %v4516_v11 = vrot.slane %v2069_v40, 5  ;;  %v759_v44 = vld [vmem:[%s4029_s9 + $0x54] sm:$0xe] }
  0x80   : > { %3296 = vmatmul.mubr.msk.bf16.gmra.mrb[4].mxu1 %vm462_vm3, %v2927_v51  ;;  %v4506_v51 = vsel %vm4223_vm7, %v818_v49, %v819_v21  ;;  %v2075_v19 = vrot.slane %v2073_v43, 4  ;;  %v826_v39 = vrot.slane %v4262_v55, 5  ;;  %v2931_v10 = vcombine.low %v4280_v28, %v4296_v37  ;;  %v3111_v55 = vld [vmem:[%s4029_s9 + $0x30] sm:$0xf]  ;;  %v3687_v20 = vld [vmem:[%s4029_s9 + $0x3c] sm:$0xff]   ;;  %v3688_v1 = vld [vmem:[%s4029_s9 + $0x48] sm:$0xff]  }
  0x81   : > { %3299 = vmatprep.mubr.msk.bf16.mxu1 %vm462_vm3, %v2928_v52  ;;  %v823_v52 = vrot.slane %v4258_v62, 5  ;;  %v2949_v41 = vcombine.low %v782_v15, %v785_v48  ;;  %v2079_v36 = vshll.u32 %v4510_v30, 16  ;;  %v2066_v21 = vor.u32 %v2065_v53, %v2062_v16  ;;  %v4542_v8 = vld [vmem:[%s4029_s9 + $0x34] sm:$0xf] }
  0x82   : > { %v2076_v28 = vor.u32 %v2075_v19, %v4516_v11  ;;  %v2093_v40 = vshll.u32 %v4523_v14, 16  ;;  %v2097_v43 = vshrl.u32 %v4523_v14, 16  ;;  %v830_v15 = vrot.slane %v4296_v37, 5 }
  0x83   : > { %v4527_v62 = vsel %vm4223_vm7, %v2946_v34, %v823_v52  ;;  %v825_v26 = vrot.slane %v823_v52, 4  ;;  %v2117_v48 = vshll.u32 %v4542_v8, 16  ;;  %v2121_v34 = vshrl.u32 %v4542_v8, 16 }
  0x84   : > { %v833_v16 = vrot.slane %v4305_v54, 5  ;;  %v2067_v53 = vrot.slane %v2066_v21, 4  ;;  %v2081_v52 = vrot.slane %v2079_v36, 5  ;;  %v2077_v37 = vrot.slane %v2076_v28, 4  ;;  %v4565_v36 = vld [vmem:[%s4029_s9 + $0x2c] sm:$0x1] }
  0x85   : > { %v4539_v24 = vsel %vm4223_vm7, %v825_v26, %v826_v39  ;;  %v4561_v26 = vrot.slane %v2093_v40, 5  ;;  %v4572_v21 = vld [vmem:[%s4029_s9 + $0x38] sm:$0x1]  ;;  %v1085_v28 = vsel %vm487_vm0, %v4403_v6, 0 }
  0x86   : > { %3382 = vmatmul.mubr.msk.bf16.vlgmr.msra.gmra.mrb[0].mxu0 %vm462_vm3, %v3683_v57  ;;  %v2087_v57 = vshll.u32 %v3108_v61, 16  ;;  %v3689_v40 = vld [vmem:[%s4029_s9 + $0x54] sm:$0xff]  }
  0x87   : > { %3398 = vmatpush3.bf16.msra.mxu0 %v2302_v18  ;;  %3385 = vmatprep.mubr.msk.bf16.mxu0 %vm462_vm3, %v3685_v4  ;;  %v2108_v18 = vshrl.u32 %v3111_v55, 16  ;;  %v2947_v4 = vrot.slane %v759_v44, 9 }
  0x88   : > { %3300 = vmatmul.mubr.msk.bf16.gmra.mrb[8].mxu1 %vm462_vm3, %v2929_v22  ;;  %3572 = vmatprep.subr.msk.bf16.mxu0 %vm487_vm0, %v4502_v38  ;;  %v2084_v22 = vshrl.u32 %v3108_v61, 16  ;;  %v832_v61 = vrot.slane %v830_v15, 4  ;;  %v2089_v54 = vrot.slane %v2087_v57, 5  ;;  %v2123_v57 = vrot.slane %v2121_v34, 4  ;;  %v3117_v34 = vld [vmem:[%s4029_s9 + $0x48] sm:$0xf] }
  0x89   : > { %3303 = vmatprep.mubr.msk.bf16.mxu1 %vm462_vm3, %v2930_v56  ;;  %v2111_v56 = vshll.u32 %v3111_v55, 16  ;;  %v4557_v19 = vsel %vm4223_vm7, %v2947_v4, %v830_v15  ;;  %v2099_v55 = vrot.slane %v2097_v43, 4  ;;  %v2110_v44 = vrot.slane %v2108_v18, 4  ;;  %v4583_v43 = vld [vmem:[%s4029_s9 + $0x40] sm:$0xf] }
  0x8a   : > { %v2086_v39 = vrot.slane %v2084_v22, 4  ;;  %v4574_v22 = vrot.slane %v2117_v48, 5  ;;  %v3690_v18 = vld [vmem:[%s4029_s9 + $0x60] sm:$0xff]   ;;  %v2082_v4 = vsel %vm4068_vm4, %v2077_v37, %v2081_v52  ;;  %v2103_v48 = vshll.u32 %v4565_v36, 16 }
  0x8b   : > { %v2156_v52 = vshrl.u32 %v3117_v34, 16  ;;  %v2159_v37 = vshll.u32 %v3117_v34, 16 }
  0x8c   : > { %v2090_v15 = vor.u32 %v2089_v54, %v2086_v39  ;;  %v2124_v63 = vor.u32 %v2123_v57, %v4574_v22  ;;  %v3120_v57 = vld [vmem:[%s4029_s9 + $0x54] sm:$0xf] }
  0x8d   : > { %v2158_v50 = vrot.slane %v2156_v52, 4  ;;  %v2183_v34 = vshll.u32 %v3120_v57, 16 }
  0x8e   : > { %3386 = vmatmul.mubr.msk.bf16.gmra.mrb[4].mxu0 %vm462_vm3, %v3687_v20  ;;  %v2113_v20 = vrot.slane %v2111_v56, 5  ;;  %v2072_v56 = vsel %vm4068_vm4, %v2067_v53, %v4516_v11  ;;  %v2141_v11 = vshll.u32 %v4583_v43, 16  ;;  %v2145_v53 = vshrl.u32 %v4583_v43, 16 }
  0x8f   : > { %3389 = vmatprep.mubr.msk.bf16.mxu0 %vm462_vm3, %v3688_v1  ;;  %v2127_v1 = vshll.u32 %v4572_v21, 16  ;;  %v3130_v54 = vcombine.low %v2072_v56, %v2082_v4  ;;  %v2125_v56 = vrot.slane %v2124_v63, 4  ;;  %v4630_v63 = vld [vmem:[%s4029_s9 + $0x50] sm:$0x1] }
  0x90   : > { %3304 = vmatmul.mubr.msk.bf16.gmra.mrb[12].mxu1 %vm462_vm3, %v2931_v10  ;;  %v4569_v10 = vsel %vm4223_vm7, %v832_v61, %v833_v16  ;;  %v4594_v16 = vld [vmem:[%s4029_s9 + $0x4c] sm:$0xf]  ;;  %v2100_v61 = vor.u32 %v2099_v55, %v4561_v26  ;;  %v2114_v6 = vor.u32 %v2113_v20, %v2110_v44  ;;  %v2091_v55 = vrot.slane %v2090_v15, 4 }
  0x91   : > { %3309 = vmatprep.mubr.msk.bf16.mxu1 %vm462_vm3, %v2949_v41  ;;  %v3114_v41 = vld [vmem:[%s4029_s9 + $0x3c] sm:$0xf]  ;;  %v2165_v39 = vshll.u32 %v4594_v16, 16  ;;  %v2105_v44 = vrot.slane %v2103_v48, 5  ;;  %v2169_v20 = vshrl.u32 %v4594_v16, 16  ;;  %v2129_v33 = vrot.slane %v2127_v1, 5 }
  0x92   : > { %v2132_v49 = vshrl.u32 %v3114_v41, 16  ;;  %v2135_v13 = vshll.u32 %v3114_v41, 16  ;;  %v2101_v41 = vrot.slane %v2100_v61, 4  ;;  %v4618_v15 = vrot.slane %v2141_v11, 5 }
  0x93   : > { %v2147_v48 = vrot.slane %v2145_v53, 4  ;;  %v2180_v1 = vshrl.u32 %v3120_v57, 16  ;;  %v1354_v11 = vshll.u32 %v4344_v59, 16  ;;  %v2096_v53 = vsel %vm4068_vm4, %v2091_v55, %v4561_v26 }
  0x94   : > { %v2134_v25 = vrot.slane %v2132_v49, 4  ;;  %v2137_v4 = vrot.slane %v2135_v13, 5  ;;  %v4627_v49 = vrot.slane %v2165_v39, 5  ;;  %v2171_v13 = vrot.slane %v2169_v20, 4 }
  0x95   : > { %v2106_v52 = vsel %vm4068_vm4, %v2101_v41, %v2105_v44  ;;  %v2148_v57 = vor.u32 %v2147_v48, %v4618_v15  ;;  %v2130_v26 = vsel %vm4068_vm4, %v2125_v56, %v2129_v33  ;;  %v2182_v44 = vrot.slane %v2180_v1, 4  ;;  %v4668_v56 = vld [vmem:[%s4029_s9 + $0x5c] sm:$0x1] }
  0x96   : > { %3390 = vmatmul.mubr.msk.bf16.gmra.mrb[8].mxu0 %vm462_vm3, %v3689_v40  ;;  %v2115_v40 = vrot.slane %v2114_v6, 4  ;;  %v2138_v20 = vor.u32 %v2137_v4, %v2134_v25  ;;  %v2172_v41 = vor.u32 %v2171_v13, %v4627_v49  ;;  %v5020_v33 = vcombine.low %v4454_v2, %v4469_v9 }
  0x97   : > { %3393 = vmatprep.mubr.msk.bf16.mxu0 %vm462_vm3, %v3690_v18  ;;  %v3691_v18 = vld [vmem:[%s4029_s9 + $0x6c] sm:$0xff]   ;;  %v2204_v4 = vshrl.u32 %v3123_v7, 16  ;;  %v1358_v48 = vshrl.u32 %v4344_v59, 16  ;;  %v3131_v13 = vcombine.low %v2096_v53, %v2106_v52 }
  0x98   : > { %3310 = vmatmul.mubr.msk.bf16.vlgmr.msra.gmra.mrb[0].mxu1 %vm462_vm3, %v2950_v27  ;;  %v4615_v27 = vld [vmem:[%s4029_s9 + $0x58] sm:$0xf]  ;;  %v2120_v39 = vsel %vm4068_vm4, %v2115_v40, %v4574_v22  ;;  %v5019_v22 = vcombine.low %v4448_v58, %v4460_v23  ;;  %v2185_v40 = vrot.slane %v2183_v34, 5  ;;  %v2207_v58 = vshll.u32 %v3123_v7, 16 }
  0x99   : > { %3326 = vmatpush3.bf16.msra.mxu1 %v1085_v28  ;;  %3313 = vmatprep.mubr.msk.bf16.mxu1 %vm462_vm3, %v2951_v29  ;;  %v3700_v28 = vld [vmem:[%s4993_s1 + $0x8] sm:$0x3]  ;;  %v2161_v29 = vrot.slane %v2159_v37, 5  ;;  %v2189_v61 = vshll.u32 %v4615_v27, 16  ;;  %v2193_v6 = vshrl.u32 %v4615_v27, 16  ;;  %v2556_v37 = vsel %vm487_vm0, %v4502_v38, 0 }
  0x9a   : > { %3568 = vmatprep.subr.msk.bf16.mxu1 %vm487_vm0, %v3700_v28  ;;  %v2151_v28 = vshll.u32 %v4625_v46, 16  ;;  %v2175_v38 = vshll.u32 %v4630_v63, 16  ;;  %v2213_v23 = vshll.u32 %v4649_v60, 16  ;;  %v3132_v34 = vcombine.low %v2120_v39, %v2130_v26 }
  0x9b   : > { %v2162_v55 = vor.u32 %v2161_v29, %v2158_v50  ;;  %v4661_v25 = vrot.slane %v2189_v61, 5  ;;  %v2139_v50 = vrot.slane %v2138_v20, 4  ;;  %v2149_v29 = vrot.slane %v2148_v57, 4 }
  0x9c   : > { %v2153_v1 = vrot.slane %v2151_v28, 5  ;;  %v2177_v9 = vrot.slane %v2175_v38, 5  ;;  %v2173_v61 = vrot.slane %v2172_v41, 4  ;;  %v2199_v7 = vshll.u32 %v4668_v56, 16  ;;  %v4689_v28 = vld [vmem:[%s4029_s9 + $0x68] sm:$0x1] }
  0x9d   : > { %v2163_v2 = vrot.slane %v2162_v55, 4  ;;  %v2206_v35 = vrot.slane %v2204_v4, 4  ;;  %v4679_v59 = vrot.slane %v2213_v23, 5  ;;  %v4681_v57 = vrot.slane %v1354_v11, 5 }
  0x9e   : > { %3394 = vmatmul.mubr.msk.bf16.gmra.mrb[12].mxu0 %vm462_vm3, %v3691_v18  ;;  %v2195_v18 = vrot.slane %v2193_v6, 4  ;;  %v2186_v6 = vor.u32 %v2185_v40, %v2182_v44  ;;  %v1360_v53 = vrot.slane %v1358_v48, 4  ;;  %v2144_v52 = vsel %vm4068_vm4, %v2139_v50, %v4618_v15 }
  0x9f   : > { %3399 = vmatprep.mubr.msk.bf16.mxu0 %vm462_vm3, %v3130_v54  ;;  %v2217_v54 = vshrl.u32 %v4649_v60, 16  ;;  %v2209_v60 = vrot.slane %v2207_v58, 5  ;;  %v2154_v39 = vsel %vm4068_vm4, %v2149_v29, %v2153_v1  ;;  %v2237_v38 = vshll.u32 %v4677_v12, 16  ;;  %v3692_v1 = vld [vmem:[%s4029_s9 + $0xc] sm:$0xff]  }
  0xa0   : > { %3314 = vmatmul.mubr.msk.bf16.gmra.mrb[4].mxu1 %vm462_vm3, %v5019_v22  ;;  %v2196_v22 = vor.u32 %v2195_v18, %v4661_v25  ;;  %v2241_v44 = vshrl.u32 %v4677_v12, 16  ;;  %v5021_v11 = vcombine.low %v4488_v47, %v4506_v51  ;;  %v2168_v15 = vsel %vm4068_vm4, %v2163_v2, %v4627_v49 }
  0xa1   : > { %3317 = vmatprep.mubr.msk.bf16.mxu1 %vm462_vm3, %v5020_v33  ;;  %v3126_v33 = vld [vmem:[%s4029_s9 + $0x6c] sm:$0xf]  ;;  %v2219_v20 = vrot.slane %v2217_v54, 4  ;;  %v2178_v41 = vsel %vm4068_vm4, %v2173_v61, %v2177_v9  ;;  %v2187_v40 = vrot.slane %v2186_v6, 4  ;;  %v2201_v18 = vrot.slane %v2199_v7, 5 }
  0xa2   : > { %v2228_v26 = vshrl.u32 %v3126_v33, 16  ;;  %v2231_v55 = vshll.u32 %v3126_v33, 16  ;;  %v5022_v4 = vcombine.low %v4527_v62, %v4539_v24  ;;  %v2197_v47 = vrot.slane %v2196_v22, 4  ;;  %v3013_v22 = vld [vmem:[%s4029_s9 + $0x48] sm:$0xf] }
  0xa3   : > { %v2210_v51 = vor.u32 %v2209_v60, %v2206_v35  ;;  %v2223_v49 = vshll.u32 %v4689_v28, 16  ;;  %v1361_v58 = vor.u32 %v1360_v53, %v4681_v57  ;;  %v1364_v23 = vshll.u32 %v4347_v0, 16  ;;  %v4718_v60 = vld [vmem:[%s4029_s9 + $0x74] sm:$0x1] }
  0xa4   : > { %v3133_v54 = vcombine.low %v2144_v52, %v2154_v39  ;;  %v2230_v48 = vrot.slane %v2228_v26, 4  ;;  %v2233_v62 = vrot.slane %v2231_v55, 5  ;;  %v4712_v24 = vrot.slane %v2237_v38, 5 }
  0xa5   : > { %v2243_v50 = vrot.slane %v2241_v44, 4  ;;  %v3134_v29 = vcombine.low %v2168_v15, %v2178_v41  ;;  %v2192_v35 = vsel %vm4068_vm4, %v2187_v40, %v4661_v25  ;;  %v2211_v0 = vrot.slane %v2210_v51, 4  ;;  %v3694_v51 = vld [vmem:[%s4029_s9 + $0x24] sm:$0xff]  }
  0xa6   : > { %3400 = vmatmul.mubr.msk.bf16.vlgmr.msra.gmra.mrb[0].mxu0 %vm462_vm3, %v3131_v13  ;;  %v2202_v13 = vsel %vm4068_vm4, %v2197_v47, %v2201_v18  ;;  %v2225_v2 = vrot.slane %v2223_v49, 5  ;;  %v1362_v9 = vrot.slane %v1361_v58, 4  ;;  %v1366_v61 = vrot.slane %v1364_v23, 5 }
  0xa7   : > { %3416 = vmatpush3.bf16.msra.mxu0 %v2556_v37  ;;  %3403 = vmatprep.mubr.msk.bf16.mxu0 %vm462_vm3, %v3132_v34  ;;  %v2220_v37 = vor.u32 %v2219_v20, %v4679_v59  ;;  %v2451_v6 = vrot.slane %v4476_v31, 5  ;;  %v2234_v7 = vor.u32 %v2233_v62, %v2230_v48  ;;  %v2244_v33 = vor.u32 %v2243_v50, %v4712_v24  ;;  %v3146_v20 = vld [vmem:[%s4029_s9 + $0x18] sm:$0xe]  ;;  %v3148_v62 = vld [vmem:[%s4029_s9 + $0x30] sm:$0xe] }
  0xa8   : > { %3318 = vmatmul.mubr.msk.bf16.gmra.mrb[8].mxu1 %vm462_vm3, %v5021_v11  ;;  %v2247_v25 = vshll.u32 %v4718_v60, 16  ;;  %v5023_v53 = vcombine.low %v4557_v19, %v4569_v10  ;;  %v3135_v52 = vcombine.low %v2192_v35, %v2202_v13  ;;  %v2216_v31 = vsel %vm4068_vm4, %v2211_v0, %v4679_v59  ;;  %v3693_v59 = vld [vmem:[%s4029_s9 + $0x18] sm:$0xff]  }
  0xa9   : > { %3321 = vmatprep.mubr.msk.bf16.mxu1 %vm462_vm3, %v5022_v4  ;;  %v2221_v34 = vrot.slane %v2220_v37, 4  ;;  %v1345_v26 = vshrl.u32 %v3013_v22, 16  ;;  %v1348_v55 = vshll.u32 %v3013_v22, 16  ;;  %v3154_v19 = vrot.slane %v3146_v20, 9  ;;  %v3010_v4 = vld [vmem:[%s4029_s9 + $0x3c] sm:$0xf] }
  0xaa   : > { %v2453_v10 = vrot.slane %v2451_v6, 4  ;;  %v2454_v38 = vrot.slane %v4510_v30, 5  ;;  %v1367_v44 = vsel %vm4068_vm4, %v1362_v9, %v1366_v61  ;;  %v2235_v11 = vrot.slane %v2234_v7, 4  ;;  %v3147_v30 = vld [vmem:[%s4029_s9 + $0x24] sm:$0xe]  ;;  %v3695_v22 = vld [vmem:[%s4029_s9 + $0x30] sm:$0xff]  }
  0xab   : > { %v2226_v39 = vsel %vm4068_vm4, %v2221_v34, %v2225_v2  ;;  %v2245_v15 = vrot.slane %v2244_v33, 4  ;;  %v2249_v41 = vrot.slane %v2247_v25, 5  ;;  %v1347_v40 = vrot.slane %v1345_v26, 4  ;;  %v3696_v20 = vld [vmem:[%s4029_s9 + $0x3c] sm:$0xff]   ;;  %v3016_v26 = vld [vmem:[%s4029_s9 + $0x54] sm:$0xf] }
  0xac   : > { %v3136_v18 = vcombine.low %v2216_v31, %v2226_v39  ;;  %v1350_v47 = vrot.slane %v1348_v55, 5  ;;  %v2452_v37 = vsel %vm4223_vm7, %v3154_v19, %v2451_v6  ;;  %v2455_v49 = vsel %vm4223_vm7, %v2453_v10, %v2454_v38  ;;  %v3150_v38 = vld [vmem:[%s4029_s9 + $0x48] sm:$0xe] }
  0xad   : > { %v2458_v58 = vrot.slane %v4523_v14, 5  ;;  %v2250_v48 = vsel %vm4068_vm4, %v2245_v15, %v2249_v41  ;;  %v2465_v50 = vrot.slane %v4542_v8, 5  ;;  %v1324_v35 = vshll.u32 %v3010_v4, 16 }
  0xae   : > { %3404 = vmatmul.mubr.msk.bf16.gmra.mrb[4].mxu0 %vm462_vm3, %v3133_v54  ;;  %v1351_v23 = vor.u32 %v1350_v47, %v1347_v40  ;;  %v2240_v54 = vsel %vm4068_vm4, %v2235_v11, %v4712_v24  ;;  %v1330_v14 = vshll.u32 %v4326_v42, 16  ;;  %v3155_v24 = vrot.slane %v3147_v30, 9 }
  0xaf   : > { %3407 = vmatprep.mubr.msk.bf16.mxu0 %vm462_vm3, %v3134_v29  ;;  %v1321_v29 = vshrl.u32 %v3010_v4, 16  ;;  %v2461_v8 = vrot.slane %v4565_v36, 5  ;;  %v3163_v0 = vcombine.low %v2452_v37, %v2455_v49  ;;  %v2460_v34 = vrot.slane %v2458_v58, 4  ;;  %v3697_v37 = vld [vmem:[%s4029_s9 + $0x48] sm:$0xff]  }
  0xb0   : > { %3322 = vmatmul.mubr.msk.bf16.gmra.mrb[12].mxu1 %vm462_vm3, %v5023_v53  ;;  %v1352_v13 = vrot.slane %v1351_v23, 4  ;;  %v3156_v2 = vrot.slane %v3148_v62, 9  ;;  %v3137_v61 = vcombine.low %v2240_v54, %v2250_v48  ;;  %v2467_v6 = vrot.slane %v2465_v50, 4  ;;  %v3698_v23 = vld [vmem:[%s4029_s9 + $0x54] sm:$0xff]  }
  0xb1   : > { %3327 = vmatprep.mubr.msk.bf16.mxu1 %vm462_vm3, %v3692_v1  ;;  %v1334_v1 = vshrl.u32 %v4326_v42, 16  ;;  %v2468_v42 = vrot.slane %v4572_v21, 5  ;;  %v1323_v7 = vrot.slane %v1321_v29, 4  ;;  %v1326_v33 = vrot.slane %v1324_v35, 5 }
  0xb2   : > { %v1357_v9 = vsel %vm4068_vm4, %v1352_v13, %v4681_v57  ;;  %v4774_v25 = vrot.slane %v1330_v14, 5  ;;  %v2459_v53 = vsel %vm4223_vm7, %v3155_v24, %v2458_v58  ;;  %v2462_v57 = vsel %vm4223_vm7, %v2460_v34, %v2461_v8  ;;  %v3151_v24 = vld [vmem:[%s4029_s9 + $0x54] sm:$0xe]  ;;  %v5024_v8 = vld [vmem:[#allocation12_spill] sm:$0xff] }
  0xb3   : > { %v1336_v36 = vrot.slane %v1334_v1, 4  ;;  %v2466_v21 = vsel %vm4223_vm7, %v3156_v2, %v2465_v50  ;;  %v2472_v31 = vrot.slane %v4583_v43, 5  ;;  %v1340_v39 = vshll.u32 %v4329_v45, 16  ;;  %v3019_v50 = vld [vmem:[%s4029_s9 + $0x60] sm:$0xf] }
  0xb4   : > { %v2469_v55 = vsel %vm4223_vm7, %v2467_v6, %v2468_v42  ;;  %v1327_v19 = vor.u32 %v1326_v33, %v1323_v7  ;;  %v3164_v43 = vcombine.low %v2459_v53, %v2462_v57  ;;  %v2475_v11 = vrot.slane %v4625_v46, 5  ;;  %v5026_v33 = vld [vmem:[#allocation9_spill] sm:$0xff] }
  0xb5   : > { %v1337_v10 = vor.u32 %v1336_v36, %v4774_v25  ;;  %v1369_v15 = vshrl.u32 %v3016_v26, 16  ;;  %v1372_v41 = vshll.u32 %v3016_v26, 16  ;;  %v1378_v40 = vshll.u32 %v4355_v17, 16 }
  0xb6   : > { %3408 = vmatmul.mubr.msk.bf16.gmra.mrb[8].mxu0 %vm462_vm3, %v3135_v52  ;;  %v3149_v52 = vld [vmem:[%s4029_s9 + $0x3c] sm:$0xe]  ;;  %v2474_v4 = vrot.slane %v2472_v31, 4  ;;  %v1342_v47 = vrot.slane %v1340_v39, 5  ;;  %v2482_v58 = vrot.slane %v4630_v63, 5  ;;  %v2486_v63 = vrot.slane %v4615_v27, 5 }
  0xb7   : > { %3411 = vmatprep.mubr.msk.bf16.mxu0 %vm462_vm3, %v3136_v18  ;;  %v3157_v45 = vrot.slane %v3149_v52, 9  ;;  %v3165_v18 = vcombine.low %v2466_v21, %v2469_v55  ;;  %v1338_v49 = vrot.slane %v1337_v10, 4  ;;  %v1371_v46 = vrot.slane %v1369_v15, 4  ;;  %v3152_v27 = vld [vmem:[%s4029_s9 + $0x60] sm:$0xe] }
  0xb8   : > { %3328 = vmatmul.mubr.msk.bf16.vlgmr.msra.gmra.mrb[0].mxu1 %vm462_vm3, %v3693_v59  ;;  %v1382_v59 = vshrl.u32 %v4355_v17, 16  ;;  %v1374_v54 = vrot.slane %v1372_v41, 5  ;;  %v1380_v48 = vrot.slane %v1378_v40, 5  ;;  %v2476_v29 = vsel %vm4223_vm7, %v2474_v4, %v2475_v11  ;;  %v3699_v52 = vld [vmem:[%s4029_s9 + $0x60] sm:$0xff]  }
  0xb9   : > { %3434 = vmatpush3.bf16.msra.mxu1 %v4010_v3  ;;  %3331 = vmatprep.mubr.msk.bf16.mxu1 %vm462_vm3, %v3694_v51  ;;  %v4771_v3 = vcombine.low %v1357_v9, %v1367_v44  ;;  %v2479_v44 = vrot.slane %v4594_v16, 5  ;;  %v3158_v51 = vrot.slane %v3150_v38, 9  ;;  %v1328_v16 = vrot.slane %v1327_v19, 4  ;;  %v5025_v9 = vld [vmem:[#allocation10_spill] sm:$0xff] }
  0xba   : > { %v1384_v62 = vrot.slane %v1382_v59, 4  ;;  %v2473_v17 = vsel %vm4223_vm7, %v3157_v45, %v2472_v31  ;;  %v1343_v1 = vsel %vm4068_vm4, %v1338_v49, %v1342_v47  ;;  %v1393_v34 = vshrl.u32 %v3019_v50, 16  ;;  %v3153_v47 = vld [vmem:[%s4029_s9 + $0x6c] sm:$0xe]  ;;  %s193_s9 = sand.u32 1, %s3827_s16  }
  0xbb   : > { %v2481_v30 = vrot.slane %v2479_v44, 4  ;;  %v2480_v35 = vsel %vm4223_vm7, %v3158_v51, %v2479_v44  ;;  %v1333_v14 = vsel %vm4068_vm4, %v1328_v16, %v4774_v25  ;;  %v1396_v2 = vshll.u32 %v3019_v50, 16  ;;  %s2903_s27 = sshll.u32 %s193_s9, 7 }
  0xbc   : > { %v1406_v6 = vshrl.u32 %v5025_v9, 16  ;;  %v3166_v42 = vcombine.low %v2473_v17, %v2476_v29  ;;  %v1385_v7 = vor.u32 %v1384_v62, %v1380_v48  ;;  %v1388_v25 = vshll.u32 %v5026_v33, 16  ;;  %s4868_s7 = scalar_lea.vmem [#allocation2], %s2903_s27  ;;  %s4898_s27 = scalar_lea.sflag [#allocation3], %s193_s9 }
  0xbd   : > { %v2483_v13 = vsel %vm4223_vm7, %v2481_v30, %v2482_v58  ;;  %v2488_v53 = vrot.slane %v2486_v63, 4  ;;  %v2489_v57 = vrot.slane %v4668_v56, 5  ;;  %v3027_v21 = vcombine.low %v1333_v14, %v1343_v1  ;;  %s2769_s19 = sshll.u32 %s4868_s7, 4  ;;  %s4891_s19 = int_to_ptr.vmem [resolvable:$true] %s2769_s19 }
  0xbe   : > { %3412 = vmatmul.mubr.msk.bf16.gmra.mrb[12].mxu0 %vm462_vm3, %v3137_v61  ;;  %v1402_v61 = vshll.u32 %v5025_v9, 16  ;;  %v3167_v36 = vcombine.low %v2480_v35, %v2483_v13  ;;  %v3160_v31 = vrot.slane %v3152_v27, 9  ;;  %v2496_v26 = vrot.slane %v4689_v28, 5  ;;  %s3701_s8 = scalar_lea.vmem %s4891_s19, 2048  ;;  %p3708_p9 = scmp.lt.s32.totalorder %s4891_s19, %s3706_s10 }
  0xbf   : > { %3417 = vmatprep.mubr.msk.bf16.mxu0 %vm462_vm3, %v3163_v0  ;;  %v2493_v0 = vrot.slane %v5024_v8, 5  ;;  %v1395_v55 = vrot.slane %v1393_v34, 4  ;;  %v1398_v19 = vrot.slane %v1396_v2, 5  ;;  %v1408_v38 = vrot.slane %v1406_v6, 4  ;;  %p3702_p5 = scmp.ne.s32.totalorder %s4891_s19, %s3701_s8  ;;  %p3709_p10 = scmp.lt.s32.totalorder %s3707_s18, %s3701_s8 }
  0xc0   : > { %3332 = vmatmul.mubr.msk.bf16.gmra.mrb[4].mxu1 %vm462_vm3, %v3695_v22  ;;  %v1375_v22 = vor.u32 %v1374_v54, %v1371_v46  ;;  %v1404_v10 = vrot.slane %v1402_v61, 5  ;;  %v1390_v45 = vrot.slane %v1388_v25, 5  ;;  %v2490_v28 = vsel %vm4223_vm7, %v2488_v53, %v2489_v57 }
  0xc1   : > { %3335 = vmatprep.mubr.msk.bf16.mxu1 %vm462_vm3, %v3696_v20  ;;  %v3159_v20 = vrot.slane %v3151_v24, 9  ;;  %v2495_v39 = vrot.slane %v2493_v0, 4  ;;  %v2494_v11 = vsel %vm4223_vm7, %v3160_v31, %v2493_v0  ;;  %v2500_v15 = vrot.slane %v4677_v12, 5  ;;  %p3703_p6 = pnand %p3702_p5, %p3950_p3  ;;  %p3710_p11 = por %p3709_p10, %p3708_p9 }
  0xc2   : > { %v1376_v44 = vrot.slane %v1375_v22, 4  ;;  %v1399_v40 = vor.u32 %v1398_v19, %v1395_v55  ;;  %v1409_v59 = vor.u32 %v1408_v38, %v1404_v10  ;;  %v3161_v30 = vrot.slane %v3153_v47, 9 }
  0xc3   : > { %v2487_v56 = vsel %vm4223_vm7, %v3159_v20, %v2486_v63  ;;  %v2497_v41 = vsel %vm4223_vm7, %v2495_v39, %v2496_v26  ;;  %v2502_v12 = vrot.slane %v2500_v15, 4  ;;  %v2503_v58 = vrot.slane %v4718_v60, 5  ;;  %p3704_p8 = pneg %p3703_p6 }
  0xc4   : > { %v1381_v51 = vsel %vm4068_vm4, %v1376_v44, %v1380_v48  ;;  %v3168_v16 = vcombine.low %v2487_v56, %v2490_v28  ;;  %v3169_v49 = vcombine.low %v2494_v11, %v2497_v41  ;;  %v1400_v46 = vrot.slane %v1399_v40, 4 }
  0xc5   : > { %v1410_v54 = vrot.slane %v1409_v59, 4  ;;  %v2501_v48 = vsel %vm4223_vm7, %v3161_v30, %v2500_v15  ;;  %v2504_v50 = vsel %vm4223_vm7, %v2502_v12, %v2503_v58  ;;  %p3711_p12 = pnand %p3710_p11, %p3704_p8 }
  0xc6   : > { %3418 = vmatmul.mubr.msk.bf16.vlgmr.msra.gmra.mrb[0].mxu0 %vm462_vm3, %v3164_v43  ;;  %v1386_v43 = vrot.slane %v1385_v7, 4  ;;  %v1405_v60 = vsel %vm4068_vm4, %v1400_v46, %v1404_v10  ;;  %v3170_v29 = vcombine.low %v2501_v48, %v2504_v50 }
  0xc7   : > { %3421 = vmatprep.mubr.msk.bf16.mxu0 %vm462_vm3, %v3165_v18  ;;  %v5027_v18 = vld [vmem:[#allocation11_spill] sm:$0xff] }
  0xc8   : > { %3336 = vmatmul.mubr.msk.bf16.gmra.mrb[8].mxu1 %vm462_vm3, %v3697_v37  ;;  %v1412_v4 = vshll.u32 %v5027_v18, 16  ;;  %v1391_v37 = vsel %vm4068_vm4, %v1386_v43, %v1390_v45 }
  0xc9   : > { %3339 = vmatprep.mubr.msk.bf16.mxu1 %vm462_vm3, %v3698_v23  ;;  %v3029_v23 = vcombine.low %v1381_v51, %v1391_v37 }
  0xca   : > { %v1414_v62 = vrot.slane %v1412_v4, 5 }
  0xcc   : > { %v1415_v17 = vsel %vm4068_vm4, %v1410_v54, %v1414_v62 }
  0xce   : > { %3422 = vmatmul.mubr.msk.bf16.gmra.mrb[4].mxu0 %vm462_vm3, %v3166_v42 }
  0xcf   : > { %3425 = vmatprep.mubr.msk.bf16.mxu0 %vm462_vm3, %v3167_v36 }
  0xd0   : > { %3340 = vmatmul.mubr.msk.bf16.gmra.mrb[12].mxu1 %vm462_vm3, %v3699_v52 }
  0xd1   : > { %3353 = vmatprep.mubr.msk.bf16.mxu1 %vm462_vm3, %v3027_v21 }
  0xd6   : > { %3426 = vmatmul.mubr.msk.bf16.gmra.mrb[8].mxu0 %vm462_vm3, %v3168_v16 }
  0xd7   : > { %3429 = vmatprep.mubr.msk.bf16.mxu0 %vm462_vm3, %v3169_v49 }
  0xd8   : > { %3354 = vmatmul.mubr.msk.bf16.vlgmr.msra.gmra.mrb[8].mxu1 %vm462_vm3, %v4771_v3  ;;  %v3030_v3 = vcombine.low %v1405_v60, %v1415_v17 }
  0xd9   : > { %3357 = vmatprep.mubr.msk.bf16.mxu1 %vm462_vm3, %v3029_v23 }
  0xde   : > { %3430 = vmatmul.mubr.msk.bf16.gmra.mrb[12].mxu0 %vm462_vm3, %v3170_v29 }
  0xe0   : > { %3358 = vmatmul.mubr.msk.bf16.gmra.mrb[12].mxu1 %vm462_vm3, %v3030_v3 }
 0x18b   : > { %v3329_v35 = vpop.f32.mrb[0].mxu1 }
 0x18c   : > { %v1121_v63 = vpop.f32.mrb[1].mxu1 }
 0x18d   : > { %v3330_v14 = vpop.f32.mrb[2].mxu1 }
 0x18e   : > { %v1124_v5 = vpop.f32.mrb[3].mxu1 }
 0x193   : > { %v3333_v1 = vpop.f32.mrb[4].mxu1 }
 0x194   : > { %v1137_v13 = vpop.f32.mrb[5].mxu1 }
 0x195   : > { %v3334_v24 = vpop.f32.mrb[6].mxu1 }
 0x196   : > { %v1140_v8 = vpop.f32.mrb[7].mxu1 }
 0x199   : > { %v3419_v0 = vpop.f32.mrb[0].mxu0 }
 0x19a   : > { %v3435_v32 = vadd.f32 %v3419_v0, %v3329_v35  ;;  %v2592_v27 = vpop.f32.mrb[1].mxu0 }
 0x19b   : > { %v3436_v34 = vadd.f32 %v2592_v27, %v1121_v63  ;;  %v3420_v2 = vpop.f32.mrb[2].mxu0 }
 0x19c   : > { %2673 = vst [vmem:[%s4868_s7 + $0x10] sm:$0xff] %v3435_v32  ;;  %v3437_v9 = vadd.f32 %v3420_v2, %v3330_v14  ;;  %v2595_v61 = vpop.f32.mrb[3].mxu0  ;;  %v2711_v33 = vmul.f32 %v3435_v32, %v3435_v32 }
 0x19d   : > { %2671 = vst [vmem:[%s4868_s7] sm:$0xff] %v3436_v34  ;;  %v3438_v6 = vadd.f32 %v2595_v61, %v1124_v5  ;;  %v2709_v42 = vmul.f32 %v3436_v34, %v3436_v34 }
 0x19e   : > { %2674 = vst [vmem:[%s4868_s7 + $0x18] sm:$0xff] %v3437_v9  ;;  %v2712_v52 = vmul.f32 %v3437_v9, %v3437_v9 }
 0x19f   : > { %2672 = vst [vmem:[%s4868_s7 + $0x8] sm:$0xff] %v3438_v6  ;;  %v2687_v22 = vadd.f32 %v3438_v6, %v3436_v34  ;;  %v2710_v7 = vmul.f32 %v3438_v6, %v3438_v6 }
 0x1a1   : > { %v2688_v25 = vadd.f32 %v3435_v32, %v2687_v22  ;;  %v2725_v36 = vadd.f32 %v2710_v7, %v2709_v42  ;;  %v3423_v20 = vpop.f32.mrb[4].mxu0 }
 0x1a2   : > { %v3439_v53 = vadd.f32 %v3423_v20, %v3333_v1  ;;  %v2608_v57 = vpop.f32.mrb[5].mxu0 }
 0x1a3   : > { %v2726_v21 = vadd.f32 %v2725_v36, %v2711_v33  ;;  %v3440_v31 = vadd.f32 %v2608_v57, %v1137_v13  ;;  %v2689_v39 = vadd.f32 %v3437_v9, %v2688_v25  ;;  %v3424_v26 = vpop.f32.mrb[6].mxu0 }
 0x1a4   : > { %2677 = vst [vmem:[%s4868_s7 + $0x30] sm:$0xff] %v3439_v53  ;;  %v3441_v55 = vadd.f32 %v3424_v26, %v3334_v24  ;;  %v2611_v19 = vpop.f32.mrb[7].mxu0  ;;  %v2715_v11 = vmul.f32 %v3439_v53, %v3439_v53 }
 0x1a5   : > { %2675 = vst [vmem:[%s4868_s7 + $0x20] sm:$0xff] %v3440_v31  ;;  %v2690_v10 = vadd.f32 %v3440_v31, %v2689_v39  ;;  %v2713_v38 = vmul.f32 %v3440_v31, %v3440_v31  ;;  %v2727_v44 = vadd.f32 %v2726_v21, %v2712_v52  ;;  %v3442_v43 = vadd.f32 %v2611_v19, %v1140_v8 }
 0x1a6   : > { %2678 = vst [vmem:[%s4868_s7 + $0x38] sm:$0xff] %v3441_v55  ;;  %v2716_v4 = vmul.f32 %v3441_v55, %v3441_v55 }
 0x1a7   : > { %v2728_v45 = vadd.f32 %v2727_v44, %v2713_v38  ;;  %2676 = vst [vmem:[%s4868_s7 + $0x28] sm:$0xff] %v3442_v43  ;;  %v2691_v56 = vadd.f32 %v3442_v43, %v2690_v10  ;;  %v2714_v28 = vmul.f32 %v3442_v43, %v3442_v43 }
 0x1a9   : > { %v2692_v15 = vadd.f32 %v3439_v53, %v2691_v56  ;;  %v2729_v41 = vadd.f32 %v2728_v45, %v2714_v28  ;;  %v3427_v40 = vpop.f32.mrb[8].mxu0 }
 0x1aa   : > { %v2624_v18 = vpop.f32.mrb[9].mxu0 }
 0x1ab   : > { %v3355_v59 = vpop.f32.mrb[8].mxu1  ;;  %v2730_v47 = vadd.f32 %v2729_v41, %v2715_v11  ;;  %v2693_v16 = vadd.f32 %v3441_v55, %v2692_v15  ;;  %v3428_v49 = vpop.f32.mrb[10].mxu0 }
 0x1ac   : > { %v3443_v51 = vadd.f32 %v3427_v40, %v3355_v59  ;;  %v1535_v37 = vpop.f32.mrb[9].mxu1  ;;  %v2627_v58 = vpop.f32.mrb[11].mxu0 }
 0x1ad   : > { %v3444_v30 = vadd.f32 %v2624_v18, %v1535_v37  ;;  %v3356_v12 = vpop.f32.mrb[10].mxu1  ;;  %v2731_v23 = vadd.f32 %v2730_v47, %v2716_v4 }
 0x1ae   : > { %2681 = vst [vmem:[%s4868_s7 + $0x50] sm:$0xff] %v3443_v51  ;;  %v3445_v46 = vadd.f32 %v3428_v49, %v3356_v12  ;;  %v1538_v54 = vpop.f32.mrb[11].mxu1  ;;  %v2719_v35 = vmul.f32 %v3443_v51, %v3443_v51 }
 0x1af   : > { %2679 = vst [vmem:[%s4868_s7 + $0x40] sm:$0xff] %v3444_v30  ;;  %v2694_v62 = vadd.f32 %v3444_v30, %v2693_v16  ;;  %v2717_v48 = vmul.f32 %v3444_v30, %v3444_v30  ;;  %v3446_v50 = vadd.f32 %v2627_v58, %v1538_v54 }
 0x1b0   : > { %2682 = vst [vmem:[%s4868_s7 + $0x58] sm:$0xff] %v3445_v46  ;;  %v2720_v0 = vmul.f32 %v3445_v46, %v3445_v46 }
 0x1b1   : > { %v2732_v60 = vadd.f32 %v2731_v23, %v2717_v48  ;;  %2680 = vst [vmem:[%s4868_s7 + $0x48] sm:$0xff] %v3446_v50  ;;  %v2695_v17 = vadd.f32 %v3446_v50, %v2694_v62  ;;  %v2718_v29 = vmul.f32 %v3446_v50, %v3446_v50  ;;  %v3431_v3 = vpop.f32.mrb[12].mxu0 }
 0x1b2   : > { %v2640_v1 = vpop.f32.mrb[13].mxu0 }
 0x1b3   : > { %v2696_v63 = vadd.f32 %v3443_v51, %v2695_v17  ;;  %v2733_v14 = vadd.f32 %v2732_v60, %v2718_v29  ;;  %v3359_v5 = vpop.f32.mrb[12].mxu1  ;;  %v3432_v8 = vpop.f32.mrb[14].mxu0 }
 0x1b4   : > { %v3447_v13 = vadd.f32 %v3431_v3, %v3359_v5  ;;  %v1551_v24 = vpop.f32.mrb[13].mxu1  ;;  %v2643_v9 = vpop.f32.mrb[15].mxu0 }
 0x1b5   : > { %v2734_v32 = vadd.f32 %v2733_v14, %v2719_v35  ;;  %v3448_v27 = vadd.f32 %v2640_v1, %v1551_v24  ;;  %v2697_v34 = vadd.f32 %v3445_v46, %v2696_v63  ;;  %v3360_v2 = vpop.f32.mrb[14].mxu1 }
 0x1b6   : > { %2685 = vst [vmem:[%s4868_s7 + $0x70] sm:$0xff] %v3447_v13  ;;  %v3449_v61 = vadd.f32 %v3432_v8, %v3360_v2  ;;  %v1554_v6 = vpop.f32.mrb[15].mxu1 }
 0x1b7   : > { %2683 = vst [vmem:[%s4868_s7 + $0x60] sm:$0xff] %v3448_v27  ;;  %v2698_v42 = vadd.f32 %v3448_v27, %v2697_v34  ;;  %v2721_v22 = vmul.f32 %v3448_v27, %v3448_v27  ;;  %v2735_v7 = vadd.f32 %v2734_v32, %v2720_v0  ;;  %v3450_v33 = vadd.f32 %v2643_v9, %v1554_v6 }
 0x1b8   : > { %2686 = vst [vmem:[%s4868_s7 + $0x78] sm:$0xff] %v3449_v61 }
 0x1b9   : > { %v2736_v25 = vadd.f32 %v2735_v7, %v2721_v22  ;;  %2684 = vst [vmem:[%s4868_s7 + $0x68] sm:$0xff] %v3450_v33  ;;  %v2699_v36 = vadd.f32 %v3450_v33, %v2698_v42  ;;  %v2722_v20 = vmul.f32 %v3450_v33, %v3450_v33 }
 0x1ba   : > { %3714 = shalt.err (!%p3711_p12)
}
 0x1bb   : > { %s3715_s9 = scalar_lea.hbm %s4889_s24, 2048  ;;  %s3719_s23 = scalar_lea.hbm %s4994_s2, 8192 }
 0x1bc   : > { %p3716_p13 = scmp.ne.s32.totalorder %s4889_s24, %s3715_s9  ;;  %p3720_p5 = scmp.lt.u32.totalorder %s4889_s24, %s4994_s2 }
 0x1bd   : > { %p3721_p6 = scmp.lt.u32.totalorder %s3719_s23, %s3715_s9  ;;  %p3723_p9 = scmp.lt.u32.totalorder %s3715_s9, %s4889_s24 }
 0x1be   : > { %p3717_p4 = pnand %p3716_p13, %p3950_p3 }
 0x1bf   : > { %p3722_p8 = por %p3721_p6, %p3720_p5 }
 0x1c0   : > { %p3718_p2 = pneg %p3717_p4 }
 0x1c1   : > { %p3724_p10 = por %p3723_p9, %p3722_p8 }
 0x1c3   : > { %p3725_p11 = pnand %p3724_p10, %p3718_p2 }
 0x1c5   : > { %3728 = shalt.err (!%p3725_p11)
}
 0x1c6   : > { %s3854_s8 = smov 128   ;;  %s3855_s18 = smov 8   ;;  %v2723_v53 = vmul.f32 %v3447_v13, %v3447_v13  ;;  %v2700_v57 = vadd.f32 %v3447_v13, %v2699_v36  ;;  %v2737_v52 = vadd.f32 %v2736_v25, %v2722_v20  ;;  %v2724_v21 = vmul.f32 %v3449_v61, %v3449_v61 }
 0x1c7   : > { %3574 = dma.vmem_to_hbm [thread:$0]  (%p3950_p3), %s4891_s19, 2048, %s4889_s24, %s4898_s27, %s3854_s8, %s3854_s8, %s3855_s18  }
 0x1c8   : > { %v2701_v31 = vadd.f32 %v3449_v61, %v2700_v57  ;;  %v2738_v39 = vadd.f32 %v2737_v52, %v2723_v53  ;;  %s200_s9 = sand.u32 1, %s3815_s13   ;;  %s3186_s30 = sshll.u32 %s4013_s4, 5 }
 0x1c9   : > { %s2904_s7 = sshll.u32 %s200_s9, 1  ;;  %s5028_s23 = sld [smem:[#allocation13_spill]] }
 0x1ca   : > { %v2702_v26 = vrot.slane %v2701_v31, 4  ;;  %v2739_v55 = vadd.f32 %v2738_v39, %v2724_v21  ;;  %s202_s19 = scalar_lea.vmem [#allocation4], %s2904_s7  ;;  %s2753_s10 = scalar_lea.sflag [#allocation5], %s200_s9 }
 0x1cb   : > { %s2787_s24 = sshll.u32 %s202_s19, 4  ;;  %s3856_s4 = smov [#allocation4]   ;;  %s4929_s24 = int_to_ptr.vmem [resolvable:$true] %s2787_s24 }
 0x1cc   : > { %v2703_v19 = vadd.f32 %v2702_v26, %v2701_v31  ;;  %v2740_v10 = vrot.slane %v2739_v55, 4  ;;  %s3729_s8 = scalar_lea.vmem %s4929_s24, 32  ;;  %s3733_s18 = sshll.u32 %s3856_s4, 4  ;;  %s3734_s18 = int_to_ptr.vmem [resolvable:$false] %s3733_s18 }
 0x1cd   : > { %p3730_p3 = scmp.ne.s32.totalorder %s4929_s24, %s3729_s8  ;;  %s3735_s7 = scalar_lea.vmem %s3734_s18, 64 }
 0x1ce   : > { %v2704_v38 = vrot.slane %v2703_v19, 2  ;;  %v2741_v44 = vadd.f32 %v2740_v10, %v2739_v55  ;;  %p3736_p4 = scmp.lt.s32.totalorder %s4929_s24, %s3734_s18  ;;  %p3737_p2 = scmp.lt.s32.totalorder %s3735_s7, %s3729_s8 }
 0x1cf   : > { %s4927_s28 = scalar_lea.hbm %s5028_s23, %s3186_s30  ;;  %p3731_p12 = pnand %p3730_p3, %p3989_p0 }
 0x1d0   : > { %v2705_v43 = vadd.f32 %v2704_v38, %v2703_v19  ;;  %v2742_v45 = vrot.slane %v2741_v44, 2  ;;  %p3738_p5 = por %p3737_p2, %p3736_p4 }
 0x1d1   : > { %p3732_p13 = pneg %p3731_p12 }
 0x1d2   : > { %v2706_v56 = vrot.slane %v2705_v43, 1  ;;  %v2743_v28 = vadd.f32 %v2742_v45, %v2741_v44 }
 0x1d3   : > { %p3739_p6 = pnand %p3738_p5, %p3732_p13 }
 0x1d4   : > { %v2707_v11 = vadd.f32 %v2706_v56, %v2705_v43  ;;  %v2744_v15 = vrot.slane %v2743_v28, 1 }
 0x1d6   : > { %2708 = vst [vmem:[%s202_s19] sm:$0x1] %v2707_v11  ;;  %v2745_v41 = vadd.f32 %v2744_v15, %v2743_v28 }
 0x1d8   : > { %2746 = vst [vmem:[%s202_s19 + $0x1] sm:$0x1] %v2745_v41 }
 0x1d9   : > { %3742 = shalt.err (!%p3739_p6)
}
 0x1da   : > { %s3743_s9 = scalar_lea.hbm %s4927_s28, 32  ;;  %s3747_s27 = scalar_lea.hbm %s5028_s23, 128 }
 0x1db   : > { %p3744_p8 = scmp.ne.s32.totalorder %s4927_s28, %s3743_s9  ;;  %p3748_p11 = scmp.lt.u32.totalorder %s4927_s28, %s5028_s23 }
 0x1dc   : > { %p3749_p3 = scmp.lt.u32.totalorder %s3747_s27, %s3743_s9  ;;  %p3751_p13 = scmp.lt.u32.totalorder %s3743_s9, %s4927_s28 }
 0x1dd   : > { %p3745_p9 = pnand %p3744_p8, %p3989_p0 }
 0x1de   : > { %p3750_p12 = por %p3749_p3, %p3748_p11 }
 0x1df   : > { %p3746_p10 = pneg %p3745_p9 }
 0x1e0   : > { %p3752_p4 = por %p3751_p13, %p3750_p12 }
 0x1e2   : > { %p3753_p2 = pnand %p3752_p4, %p3746_p10 }
 0x1e4   : > { %3756 = shalt.err (!%p3753_p2)
}
 0x1e5   : > { %3575 = dma.vmem_to_hbm [thread:$0]  (%p3989_p0), %s4929_s24, 32, %s4927_s28, %s2753_s10  }
 0x1e6 PF: > { %s5029_s8 = sld [smem:[#allocation8_spill]]  ;;  %p3585_p5 = scmp.ge.s32.totalorder %s3851_s22, 2 }
 0x1e8   : > { %p3579_p6 = pnand %p3585_p5, %p3965_p7 }
 0x1ec   : > { %s2799_s18 = sand.u32 1, %s5029_s8  }
 0x1ed   : > { %s2800_s7 = scalar_lea.sflag [#allocation3], %s2799_s18 }
 0x1ee   : > { %3802 = dma.done.wait (!%p3579_p6), %s2800_s7, 2048  }
 0x1ef   : > { %3804 = vsyncadd (!%p3579_p6), %s2800_s7, 4294965248  ;;  %s2808_s9 = sand.u32 1, %s3811_s12   ;;  %p3582_p8 = pnand %p3585_p5, %p3995_p1 }
 0x1f0   : > { %s2809_s5 = scalar_lea.sflag [#allocation5], %s2808_s9 }
 0x1f1   : > { %3806 = dma.done.wait (!%p3582_p8), %s2809_s5, 32  }
 0x1f2   : > { %3808 = vsyncadd (!%p3582_p8), %s2809_s5, 4294967264  ;;  %s20_s22 = sadd.s32 1, %s3851_s22   ;;  %s5030_s6 = smov %s3976_s15 }
 0x1f3   : > { %p17_p0 = scmp.ge.s32.totalorder %s20_s22, 6   ;;  %s5031_s12 = smov %s3815_s13 }
 0x1f4   : > { %s5032_s13 = smov %s3819_s14  ;;  %s5033_s14 = smov %s3979_s3 }
 0x1f5   : > { %s5034_s15 = smov %s3827_s16  ;;  %s5035_s16 = smov %s3831_s17 }
 0x1f6   : > { %s5036_s17 = smov %s5030_s6  ;;  %s5037_s18 = smov %s3843_s20 }
 0x1f7   : > { %s5038_s19 = smov %s3847_s21  ;;  %s5039_s20 = smov %s5042_s25 }
 0x1f8   : > { %s5040_s21 = smov %s5046_s26  ;;  %19 = sbr.rel (!%p17_p0) target bundleno = 11 (0xb), region = 90 }
 0x1ff   :  { %2814 = vsyncpa [#allocation3], 1 }
 0x200   :  { %2816 = vsyncpa [#allocation3 + $0x1], 1 }
 0x201   :  { %2817 = vsyncpa [#allocation5], 1 }
 0x202   :  { %2819 = vsyncpa [#allocation5 + $0x1], 1 }

</bundles_post_ra>
